<compile_context>
chip_gen: v5e
topology: v5e:2x2
jax: 0.10.0
libtpu: 0.0.40
codegen_flags: <defaults>
</compile_context>

<pallas_src>
import functools

import jax
import jax.numpy as jnp
from jax import lax
from jax.experimental import pallas as pl
from jax.experimental.pallas import tpu as pltpu

EPS = 1e-5
INV_SQRT2 = 0.7071067811865476


def _gelu(v):
    # exact (erf-based) GELU, matching torch.nn.GELU() default
    return 0.5 * v * (1.0 + lax.erf(v * INV_SQRT2))


def _residual_block_kernel(x_ref, w1_ref, w2_ref, bn_ref, o_ref, *,
                           cin, cout, img_h, img_w, is_res, same_channels):
    del cin, cout  # shapes carry the channel counts
    NP = x_ref.shape[1]                                   # N * H * W (lane axis)
    H, W = img_h, img_w
    HW = H * W
    inv_n = 1.0 / float(NP)

    # --- in-kernel border masks (no DMA) -------------------------------------------------
    # per-lane pixel coordinates from an iota; masks are separable row/col validity tests.
    idx = lax.broadcasted_iota(jnp.int32, (1, NP), 1)
    if (W & (W - 1)) == 0 and (HW & (HW - 1)) == 0:
        p = jnp.bitwise_and(idx, HW - 1)
        hh = jnp.right_shift(p, W.bit_length() - 1)
        ww = jnp.bitwise_and(p, W - 1)
    else:
        # general (non power-of-two) fallback; only traced for such shapes.
        p = idx % HW
        hh = p // W
        ww = p % W
    one = jnp.float32(1.0)
    zero = jnp.float32(0.0)
    rm = {-1: jnp.where(hh >= 1, one, zero), 1: jnp.where(hh <= H - 2, one, zero)}
    cm = {-1: jnp.where(ww >= 1, one, zero), 1: jnp.where(ww <= W - 2, one, zero)}
    masks = {}
    for dy in (-1, 0, 1):
        for dx in (-1, 0, 1):
            m = None
            if dy != 0:
                m = rm[dy]
            if dx != 0:
                m = cm[dx] if m is None else m * cm[dx]
            masks[(dy, dx)] = m                           # None for the centre tap

    # --- conv3x3 as one MXU matmul over stacked rolled taps -------------------------------
    # NOTE: the cross-image wrap of pltpu.roll over the flattened N*H*W axis is neutralized
    # by the border masks because |off| <= W+1 < H*W (degenerate 1-pixel images excluded).
    def conv3x3(x, w_ref):
        taps = []
        for dy in (-1, 0, 1):
            for dx in (-1, 0, 1):
                off = dy * W + dx
                t = x if off == 0 else pltpu.roll(x, shift=(-off) % NP, axis=1)
                m = masks[(dy, dx)]
                if m is not None:
                    t = t * m
                taps.append(t)                            # (ci, NP)
        stacked = jnp.concatenate(taps, axis=0)           # (9*ci, NP)
        return jnp.dot(w_ref[...], stacked,               # (co, 9*ci) @ (9*ci, NP)
                       preferred_element_type=jnp.float32)

    # --- train-mode BatchNorm (stats over the lane axis) + GELU, affine fused -------------
    def bn_gelu(y, g, be):
        m = jnp.sum(y, axis=1, keepdims=True) * inv_n     # (C, 1)
        c = y - m
        var = jnp.sum(c * c, axis=1, keepdims=True) * inv_n
        scale = lax.rsqrt(var + EPS) * g                  # fold gamma into the (C,1) column
        return _gelu(c * scale + be)

    x = x_ref[...]                                        # (cin, NP)
    g1, be1 = bn_ref[:, 0:1], bn_ref[:, 1:2]
    g2, be2 = bn_ref[:, 2:3], bn_ref[:, 3:4]

    x1 = bn_gelu(conv3x3(x, w1_ref), g1, be1)
    x2 = bn_gelu(conv3x3(x1, w2_ref), g2, be2)

    if is_res:
        if same_channels:
            out = (x + x2) * (1.0 / 1.414)
        else:
            # TODO(synk): PyTorch builds a freshly random 1x1 shortcut conv inside forward()
            # (nondeterministic weights per call); not reproducible here.
            out = x2 * (1.0 / 1.414)
    else:
        out = x2
    o_ref[...] = out.astype(o_ref.dtype)


def residual_conv_block(x_nchw, params, *, is_res):
    N, Cin, H, W = x_nchw.shape
    Cout = params["w1"].shape[0]
    same_channels = (Cin == Cout)
    NP = N * H * W

    # Glue: NCHW -> lane-dense (C, N*H*W); conv weights OIHW -> (O, 9*I) with row index
    # matching the in-kernel tap order (d = (dy+1)*3 + (dx+1)) * I + ci.
    x_flat = jnp.transpose(x_nchw, (1, 0, 2, 3)).reshape(Cin, NP).astype(jnp.float32)
    w1 = jnp.transpose(params["w1"], (0, 2, 3, 1)).reshape(Cout, 9 * Cin).astype(jnp.float32)
    w2 = jnp.transpose(params["w2"], (0, 2, 3, 1)).reshape(Cout, 9 * Cout).astype(jnp.float32)
    # conv biases b1/b2 are dropped on purpose: they cancel exactly under train-mode BatchNorm.
    bn = jnp.stack([params["g1"], params["be1"], params["g2"], params["be2"]],
                   axis=1).astype(jnp.float32)            # (Cout, 4): one DMA for all BN params

    kernel = functools.partial(_residual_block_kernel, cin=Cin, cout=Cout,
                               img_h=H, img_w=W, is_res=is_res, same_channels=same_channels)

    def full_spec(shape):
        return pl.BlockSpec(shape, lambda i, _r=len(shape): (0,) * _r)

    # TODO(synk): at these shapes the call is launch/fixed-overhead bound; for large images
    # (or v7x's 2nd TensorCore) add a spatially tiled grid with two-pass BN statistics and
    # re-derive the lane tile for v7x's 64 MiB VMEM. Here the whole problem is a few tens of
    # KB and fits one VMEM-resident step.
    out_flat = pl.pallas_call(
        kernel,
        out_shape=jax.ShapeDtypeStruct((Cout, NP), jnp.float32),
        grid=(1,),
        in_specs=[
            full_spec((Cin, NP)),
            full_spec((Cout, 9 * Cin)),
            full_spec((Cout, 9 * Cout)),
            full_spec((Cout, 4)),
        ],
        out_specs=full_spec((Cout, NP)),
        compiler_params=pltpu.CompilerParams(
            dimension_semantics=("arbitrary",),
            vmem_limit_bytes=32 * 1024 * 1024),
    )(x_flat, w1, w2, bn)

    return jnp.transpose(out_flat.reshape(Cout, N, H, W), (1, 0, 2, 3))


def reference_forward(x_nchw, params, *, is_res):
    """Pure-JAX reference matching the PyTorch forward (training-mode BatchNorm, exact GELU)."""
    def conv(x, w, b):
        y = lax.conv_general_dilated(x, w, (1, 1), ((1, 1), (1, 1)),
                                     dimension_numbers=("NCHW", "OIHW", "NCHW"))
        return y + b[None, :, None, None]

    def bn_train(y, g, be):
        m = y.mean(axis=(0, 2, 3), keepdims=True)
        v = y.var(axis=(0, 2, 3), keepdims=True)  # biased variance, as in torch train-mode
        return (y - m) / jnp.sqrt(v + EPS) * g[None, :, None, None] + be[None, :, None, None]

    x1 = _gelu(bn_train(conv(x_nchw, params["w1"], params["b1"]), params["g1"], params["be1"]))
    x2 = _gelu(bn_train(conv(x1, params["w2"], params["b2"]), params["g2"], params["be2"]))
    if is_res:
        return (x_nchw + x2) / 1.414
    return x2


def init_params(key, cin, cout):
    ks = jax.random.split(key, 8)

    def cw(k, ci, co):
        bound = 1.0 / (ci * 9) ** 0.5
        return jax.random.uniform(k, (co, ci, 3, 3), jnp.float32, -bound, bound)

    def cb(k, ci, co):
        bound = 1.0 / (ci * 9) ** 0.5
        return jax.random.uniform(k, (co,), jnp.float32, -bound, bound)

    return dict(
        w1=cw(ks[0], cin, cout), b1=cb(ks[1], cin, cout),
        g1=1.0 + 0.1 * jax.random.normal(ks[2], (cout,), jnp.float32),
        be1=0.1 * jax.random.normal(ks[3], (cout,), jnp.float32),
        w2=cw(ks[4], cout, cout), b2=cb(ks[5], cout, cout),
        g2=1.0 + 0.1 * jax.random.normal(ks[6], (cout,), jnp.float32),
        be2=0.1 * jax.random.normal(ks[7], (cout,), jnp.float32),
    )


if __name__ == "__main__":
    key = jax.random.PRNGKey(0)
    kx, kp = jax.random.split(key)
    N, C, H, W = 2, 4, 16, 16                 # input_channels == output_channels, is_res_block=True
    x = jax.random.normal(kx, (N, C, H, W), jnp.float32)   # NCHW like PyTorch
    params = init_params(kp, C, C)

    out = residual_conv_block(x, params, is_res=True)
    out = jax.block_until_ready(out)

    ref = reference_forward(x, params, is_res=True)
    assert out.shape == (N, C, H, W)
    max_err = float(jnp.max(jnp.abs(out - ref)))
    assert jnp.allclose(out, ref, atol=1e-3, rtol=1e-3), f"max abs err = {max_err}"
    print("KERNEL_OK")
</pallas_src>

<mosaic_0001>
module attributes {stable_mosaic.version = 11 : i64} {
  func.func @_residual_block_kernel(%arg0: i32, %arg1: memref<4x512xf32, #tpu.memory_space<vmem>>, %arg2: memref<4x36xf32, #tpu.memory_space<vmem>>, %arg3: memref<4x36xf32, #tpu.memory_space<vmem>>, %arg4: memref<4x4xf32, #tpu.memory_space<vmem>>, %arg5: memref<4x512xf32, #tpu.memory_space<vmem>>) attributes {dimension_semantics = [#tpu.dimension_semantics<arbitrary>], iteration_bounds = array<i64: 1>, scalar_prefetch = 0 : i64, scratch_operands = 0 : i64, tpu.core_type = #tpu.core_type<tc>, window_params = [{pipeline_mode = #tpu.pipeline_mode<synchronous>, transform_indices = @transform_0, window_bounds = array<i64: 4, 512>}, {pipeline_mode = #tpu.pipeline_mode<synchronous>, transform_indices = @transform_1, window_bounds = array<i64: 4, 36>}, {pipeline_mode = #tpu.pipeline_mode<synchronous>, transform_indices = @transform_2, window_bounds = array<i64: 4, 36>}, {pipeline_mode = #tpu.pipeline_mode<synchronous>, transform_indices = @transform_3, window_bounds = array<i64: 4, 4>}, {pipeline_mode = #tpu.pipeline_mode<synchronous>, transform_indices = @transform_4, window_bounds = array<i64: 4, 512>}]} {
    %0 = tpu.iota {dimensions = array<i32: 1>} : vector<1x512xi32>
    %c255_i32 = arith.constant 255 : i32
    %1 = vector.broadcast %c255_i32 : i32 to vector<1x512xi32>
    %2 = arith.andi %0, %1 : vector<1x512xi32>
    %c4_i32 = arith.constant 4 : i32
    %3 = vector.broadcast %c4_i32 : i32 to vector<1x512xi32>
    %4 = arith.shrsi %2, %3 : vector<1x512xi32>
    %c15_i32 = arith.constant 15 : i32
    %5 = vector.broadcast %c15_i32 : i32 to vector<1x512xi32>
    %6 = arith.andi %2, %5 : vector<1x512xi32>
    %c1_i32 = arith.constant 1 : i32
    %7 = vector.broadcast %c1_i32 : i32 to vector<1x512xi32>
    %8 = arith.cmpi sge, %4, %7 : vector<1x512xi32>
    %cst = arith.constant 1.000000e+00 : f32
    %cst_0 = arith.constant 0.000000e+00 : f32
    %9 = vector.broadcast %cst : f32 to vector<1x512xf32>
    %10 = vector.broadcast %cst_0 : f32 to vector<1x512xf32>
    %11 = arith.select %8, %9, %10 : vector<1x512xi1>, vector<1x512xf32>
    %c14_i32 = arith.constant 14 : i32
    %12 = vector.broadcast %c14_i32 : i32 to vector<1x512xi32>
    %13 = arith.cmpi sle, %4, %12 : vector<1x512xi32>
    %cst_1 = arith.constant 1.000000e+00 : f32
    %cst_2 = arith.constant 0.000000e+00 : f32
    %14 = vector.broadcast %cst_1 : f32 to vector<1x512xf32>
    %15 = vector.broadcast %cst_2 : f32 to vector<1x512xf32>
    %16 = arith.select %13, %14, %15 : vector<1x512xi1>, vector<1x512xf32>
    %c1_i32_3 = arith.constant 1 : i32
    %17 = vector.broadcast %c1_i32_3 : i32 to vector<1x512xi32>
    %18 = arith.cmpi sge, %6, %17 : vector<1x512xi32>
    %cst_4 = arith.constant 1.000000e+00 : f32
    %cst_5 = arith.constant 0.000000e+00 : f32
    %19 = vector.broadcast %cst_4 : f32 to vector<1x512xf32>
    %20 = vector.broadcast %cst_5 : f32 to vector<1x512xf32>
    %21 = arith.select %18, %19, %20 : vector<1x512xi1>, vector<1x512xf32>
    %c14_i32_6 = arith.constant 14 : i32
    %22 = vector.broadcast %c14_i32_6 : i32 to vector<1x512xi32>
    %23 = arith.cmpi sle, %6, %22 : vector<1x512xi32>
    %cst_7 = arith.constant 1.000000e+00 : f32
    %cst_8 = arith.constant 0.000000e+00 : f32
    %24 = vector.broadcast %cst_7 : f32 to vector<1x512xf32>
    %25 = vector.broadcast %cst_8 : f32 to vector<1x512xf32>
    %26 = arith.select %23, %24, %25 : vector<1x512xi1>, vector<1x512xf32>
    %27 = arith.mulf %11, %21 : vector<1x512xf32>
    %28 = arith.mulf %11, %26 : vector<1x512xf32>
    %29 = arith.mulf %16, %21 : vector<1x512xf32>
    %30 = arith.mulf %16, %26 : vector<1x512xf32>
    %c0 = arith.constant 0 : index
    %c0_9 = arith.constant 0 : index
    %31 = vector.load %arg1[%c0, %c0_9] : memref<4x512xf32, #tpu.memory_space<vmem>>, vector<4x512xf32>
    %c0_10 = arith.constant 0 : index
    %c0_11 = arith.constant 0 : index
    %32 = vector.load %arg4[%c0_10, %c0_11] : memref<4x4xf32, #tpu.memory_space<vmem>>, vector<4x1xf32>
    %c0_12 = arith.constant 0 : index
    %c1 = arith.constant 1 : index
    %33 = vector.load %arg4[%c0_12, %c1] : memref<4x4xf32, #tpu.memory_space<vmem>>, vector<4x1xf32>
    %c0_13 = arith.constant 0 : index
    %c2 = arith.constant 2 : index
    %34 = vector.load %arg4[%c0_13, %c2] : memref<4x4xf32, #tpu.memory_space<vmem>>, vector<4x1xf32>
    %c0_14 = arith.constant 0 : index
    %c3 = arith.constant 3 : index
    %35 = vector.load %arg4[%c0_14, %c3] : memref<4x4xf32, #tpu.memory_space<vmem>>, vector<4x1xf32>
    %c17_i32 = arith.constant 17 : i32
    %36 = tpu.dynamic_rotate %31 by %c17_i32 dim 1 : vector<4x512xf32>, i32 -> vector<4x512xf32>
    %37 = vector.broadcast %27 : vector<1x512xf32> to vector<4x512xf32>
    %38 = arith.mulf %36, %37 : vector<4x512xf32>
    %c16_i32 = arith.constant 16 : i32
    %39 = tpu.dynamic_rotate %31 by %c16_i32 dim 1 : vector<4x512xf32>, i32 -> vector<4x512xf32>
    %40 = vector.broadcast %11 : vector<1x512xf32> to vector<4x512xf32>
    %41 = arith.mulf %39, %40 : vector<4x512xf32>
    %c15_i32_15 = arith.constant 15 : i32
    %42 = tpu.dynamic_rotate %31 by %c15_i32_15 dim 1 : vector<4x512xf32>, i32 -> vector<4x512xf32>
    %43 = vector.broadcast %28 : vector<1x512xf32> to vector<4x512xf32>
    %44 = arith.mulf %42, %43 : vector<4x512xf32>
    %c1_i32_16 = arith.constant 1 : i32
    %45 = tpu.dynamic_rotate %31 by %c1_i32_16 dim 1 : vector<4x512xf32>, i32 -> vector<4x512xf32>
    %46 = vector.broadcast %21 : vector<1x512xf32> to vector<4x512xf32>
    %47 = arith.mulf %45, %46 : vector<4x512xf32>
    %c511_i32 = arith.constant 511 : i32
    %48 = tpu.dynamic_rotate %31 by %c511_i32 dim 1 : vector<4x512xf32>, i32 -> vector<4x512xf32>
    %49 = vector.broadcast %26 : vector<1x512xf32> to vector<4x512xf32>
    %50 = arith.mulf %48, %49 : vector<4x512xf32>
    %c497_i32 = arith.constant 497 : i32
    %51 = tpu.dynamic_rotate %31 by %c497_i32 dim 1 : vector<4x512xf32>, i32 -> vector<4x512xf32>
    %52 = vector.broadcast %29 : vector<1x512xf32> to vector<4x512xf32>
    %53 = arith.mulf %51, %52 : vector<4x512xf32>
    %c496_i32 = arith.constant 496 : i32
    %54 = tpu.dynamic_rotate %31 by %c496_i32 dim 1 : vector<4x512xf32>, i32 -> vector<4x512xf32>
    %55 = vector.broadcast %16 : vector<1x512xf32> to vector<4x512xf32>
    %56 = arith.mulf %54, %55 : vector<4x512xf32>
    %c495_i32 = arith.constant 495 : i32
    %57 = tpu.dynamic_rotate %31 by %c495_i32 dim 1 : vector<4x512xf32>, i32 -> vector<4x512xf32>
    %58 = vector.broadcast %30 : vector<1x512xf32> to vector<4x512xf32>
    %59 = arith.mulf %57, %58 : vector<4x512xf32>
    %60 = tpu.concatenate %38, %41, %44, %47, %31, %50, %53, %56, %59 in 0 : vector<4x512xf32>, vector<4x512xf32>, vector<4x512xf32>, vector<4x512xf32>, vector<4x512xf32>, vector<4x512xf32>, vector<4x512xf32>, vector<4x512xf32>, vector<4x512xf32> -> vector<36x512xf32>
    %c0_17 = arith.constant 0 : index
    %c0_18 = arith.constant 0 : index
    %61 = vector.load %arg2[%c0_17, %c0_18] : memref<4x36xf32, #tpu.memory_space<vmem>>, vector<4x36xf32>
    %cst_19 = arith.constant dense<0.000000e+00> : vector<4x512xf32>
    %62 = tpu.matmul %61, %60, %cst_19 {dimension_numbers = #tpu.dot_dimension_numbers<[1], [0], [0], [1], [0, 0, 1, 1], [], []>} : vector<4x36xf32>, vector<36x512xf32>, vector<4x512xf32> -> vector<4x512xf32>
    %cst_20 = arith.constant dense<0.000000e+00> : vector<4xf32>
    %63 = vector.multi_reduction <add>, %62, %cst_20 [1] : vector<4x512xf32> to vector<4xf32>
    %64 = vector.shape_cast %63 : vector<4xf32> to vector<4x1xf32>
    %cst_21 = arith.constant 0.001953125 : f32
    %65 = vector.broadcast %cst_21 : f32 to vector<4x1xf32>
    %66 = arith.mulf %64, %65 : vector<4x1xf32>
    %67 = vector.broadcast %66 : vector<4x1xf32> to vector<4x512xf32>
    %68 = arith.subf %62, %67 : vector<4x512xf32>
    %69 = arith.mulf %68, %68 : vector<4x512xf32>
    %cst_22 = arith.constant dense<0.000000e+00> : vector<4xf32>
    %70 = vector.multi_reduction <add>, %69, %cst_22 [1] : vector<4x512xf32> to vector<4xf32>
    %71 = vector.shape_cast %70 : vector<4xf32> to vector<4x1xf32>
    %cst_23 = arith.constant 0.001953125 : f32
    %72 = vector.broadcast %cst_23 : f32 to vector<4x1xf32>
    %73 = arith.mulf %71, %72 : vector<4x1xf32>
    %cst_24 = arith.constant 9.99999974E-6 : f32
    %74 = vector.broadcast %cst_24 : f32 to vector<4x1xf32>
    %75 = arith.addf %73, %74 : vector<4x1xf32>
    %76 = math.rsqrt %75 : vector<4x1xf32>
    %77 = arith.mulf %76, %32 : vector<4x1xf32>
    %78 = vector.broadcast %77 : vector<4x1xf32> to vector<4x512xf32>
    %79 = arith.mulf %68, %78 : vector<4x512xf32>
    %80 = vector.broadcast %33 : vector<4x1xf32> to vector<4x512xf32>
    %81 = arith.addf %79, %80 : vector<4x512xf32>
    %cst_25 = arith.constant 5.000000e-01 : f32
    %82 = vector.broadcast %cst_25 : f32 to vector<4x512xf32>
    %83 = arith.mulf %82, %81 : vector<4x512xf32>
    %cst_26 = arith.constant 0.707106769 : f32
    %84 = vector.broadcast %cst_26 : f32 to vector<4x512xf32>
    %85 = arith.mulf %81, %84 : vector<4x512xf32>
    %86 = math.erf %85 : vector<4x512xf32>
    %cst_27 = arith.constant 1.000000e+00 : f32
    %87 = vector.broadcast %cst_27 : f32 to vector<4x512xf32>
    %88 = arith.addf %87, %86 : vector<4x512xf32>
    %89 = arith.mulf %83, %88 : vector<4x512xf32>
    %c17_i32_28 = arith.constant 17 : i32
    %90 = tpu.dynamic_rotate %89 by %c17_i32_28 dim 1 : vector<4x512xf32>, i32 -> vector<4x512xf32>
    %91 = vector.broadcast %27 : vector<1x512xf32> to vector<4x512xf32>
    %92 = arith.mulf %90, %91 : vector<4x512xf32>
    %c16_i32_29 = arith.constant 16 : i32
    %93 = tpu.dynamic_rotate %89 by %c16_i32_29 dim 1 : vector<4x512xf32>, i32 -> vector<4x512xf32>
    %94 = vector.broadcast %11 : vector<1x512xf32> to vector<4x512xf32>
    %95 = arith.mulf %93, %94 : vector<4x512xf32>
    %c15_i32_30 = arith.constant 15 : i32
    %96 = tpu.dynamic_rotate %89 by %c15_i32_30 dim 1 : vector<4x512xf32>, i32 -> vector<4x512xf32>
    %97 = vector.broadcast %28 : vector<1x512xf32> to vector<4x512xf32>
    %98 = arith.mulf %96, %97 : vector<4x512xf32>
    %c1_i32_31 = arith.constant 1 : i32
    %99 = tpu.dynamic_rotate %89 by %c1_i32_31 dim 1 : vector<4x512xf32>, i32 -> vector<4x512xf32>
    %100 = vector.broadcast %21 : vector<1x512xf32> to vector<4x512xf32>
    %101 = arith.mulf %99, %100 : vector<4x512xf32>
    %c511_i32_32 = arith.constant 511 : i32
    %102 = tpu.dynamic_rotate %89 by %c511_i32_32 dim 1 : vector<4x512xf32>, i32 -> vector<4x512xf32>
    %103 = vector.broadcast %26 : vector<1x512xf32> to vector<4x512xf32>
    %104 = arith.mulf %102, %103 : vector<4x512xf32>
    %c497_i32_33 = arith.constant 497 : i32
    %105 = tpu.dynamic_rotate %89 by %c497_i32_33 dim 1 : vector<4x512xf32>, i32 -> vector<4x512xf32>
    %106 = vector.broadcast %29 : vector<1x512xf32> to vector<4x512xf32>
    %107 = arith.mulf %105, %106 : vector<4x512xf32>
    %c496_i32_34 = arith.constant 496 : i32
    %108 = tpu.dynamic_rotate %89 by %c496_i32_34 dim 1 : vector<4x512xf32>, i32 -> vector<4x512xf32>
    %109 = vector.broadcast %16 : vector<1x512xf32> to vector<4x512xf32>
    %110 = arith.mulf %108, %109 : vector<4x512xf32>
    %c495_i32_35 = arith.constant 495 : i32
    %111 = tpu.dynamic_rotate %89 by %c495_i32_35 dim 1 : vector<4x512xf32>, i32 -> vector<4x512xf32>
    %112 = vector.broadcast %30 : vector<1x512xf32> to vector<4x512xf32>
    %113 = arith.mulf %111, %112 : vector<4x512xf32>
    %114 = tpu.concatenate %92, %95, %98, %101, %89, %104, %107, %110, %113 in 0 : vector<4x512xf32>, vector<4x512xf32>, vector<4x512xf32>, vector<4x512xf32>, vector<4x512xf32>, vector<4x512xf32>, vector<4x512xf32>, vector<4x512xf32>, vector<4x512xf32> -> vector<36x512xf32>
    %c0_36 = arith.constant 0 : index
    %c0_37 = arith.constant 0 : index
    %115 = vector.load %arg3[%c0_36, %c0_37] : memref<4x36xf32, #tpu.memory_space<vmem>>, vector<4x36xf32>
    %cst_38 = arith.constant dense<0.000000e+00> : vector<4x512xf32>
    %116 = tpu.matmul %115, %114, %cst_38 {dimension_numbers = #tpu.dot_dimension_numbers<[1], [0], [0], [1], [0, 0, 1, 1], [], []>} : vector<4x36xf32>, vector<36x512xf32>, vector<4x512xf32> -> vector<4x512xf32>
    %cst_39 = arith.constant dense<0.000000e+00> : vector<4xf32>
    %117 = vector.multi_reduction <add>, %116, %cst_39 [1] : vector<4x512xf32> to vector<4xf32>
    %118 = vector.shape_cast %117 : vector<4xf32> to vector<4x1xf32>
    %cst_40 = arith.constant 0.001953125 : f32
    %119 = vector.broadcast %cst_40 : f32 to vector<4x1xf32>
    %120 = arith.mulf %118, %119 : vector<4x1xf32>
    %121 = vector.broadcast %120 : vector<4x1xf32> to vector<4x512xf32>
    %122 = arith.subf %116, %121 : vector<4x512xf32>
    %123 = arith.mulf %122, %122 : vector<4x512xf32>
    %cst_41 = arith.constant dense<0.000000e+00> : vector<4xf32>
    %124 = vector.multi_reduction <add>, %123, %cst_41 [1] : vector<4x512xf32> to vector<4xf32>
    %125 = vector.shape_cast %124 : vector<4xf32> to vector<4x1xf32>
    %cst_42 = arith.constant 0.001953125 : f32
    %126 = vector.broadcast %cst_42 : f32 to vector<4x1xf32>
    %127 = arith.mulf %125, %126 : vector<4x1xf32>
    %cst_43 = arith.constant 9.99999974E-6 : f32
    %128 = vector.broadcast %cst_43 : f32 to vector<4x1xf32>
    %129 = arith.addf %127, %128 : vector<4x1xf32>
    %130 = math.rsqrt %129 : vector<4x1xf32>
    %131 = arith.mulf %130, %34 : vector<4x1xf32>
    %132 = vector.broadcast %131 : vector<4x1xf32> to vector<4x512xf32>
    %133 = arith.mulf %122, %132 : vector<4x512xf32>
    %134 = vector.broadcast %35 : vector<4x1xf32> to vector<4x512xf32>
    %135 = arith.addf %133, %134 : vector<4x512xf32>
    %cst_44 = arith.constant 5.000000e-01 : f32
    %136 = vector.broadcast %cst_44 : f32 to vector<4x512xf32>
    %137 = arith.mulf %136, %135 : vector<4x512xf32>
    %cst_45 = arith.constant 0.707106769 : f32
    %138 = vector.broadcast %cst_45 : f32 to vector<4x512xf32>
    %139 = arith.mulf %135, %138 : vector<4x512xf32>
    %140 = math.erf %139 : vector<4x512xf32>
    %cst_46 = arith.constant 1.000000e+00 : f32
    %141 = vector.broadcast %cst_46 : f32 to vector<4x512xf32>
    %142 = arith.addf %141, %140 : vector<4x512xf32>
    %143 = arith.mulf %137, %142 : vector<4x512xf32>
    %144 = arith.addf %31, %143 : vector<4x512xf32>
    %cst_47 = arith.constant 0.70721358 : f32
    %145 = vector.broadcast %cst_47 : f32 to vector<4x512xf32>
    %146 = arith.mulf %144, %145 : vector<4x512xf32>
    %c0_48 = arith.constant 0 : index
    %c0_49 = arith.constant 0 : index
    %147 = vector.load %arg5[%c0_48, %c0_49] : memref<4x512xf32, #tpu.memory_space<vmem>>, vector<4x512xf32>
    tpu.vector_store %arg5[%c0_48, %c0_49], %146 {strides = array<i32>} : memref<4x512xf32, #tpu.memory_space<vmem>>, vector<4x512xf32>,
    return
  }
  func.func @transform_0(%arg0: i32) -> (i32, i32) {
    %c0_i32 = arith.constant 0 : i32
    %c0_i32_0 = arith.constant 0 : i32
    %c0_i32_1 = arith.constant 0 : i32
    return %c0_i32, %c0_i32_0 : i32, i32
  }
  func.func @transform_1(%arg0: i32) -> (i32, i32) {
    %c0_i32 = arith.constant 0 : i32
    %c0_i32_0 = arith.constant 0 : i32
    %c0_i32_1 = arith.constant 0 : i32
    return %c0_i32, %c0_i32_0 : i32, i32
  }
  func.func @transform_2(%arg0: i32) -> (i32, i32) {
    %c0_i32 = arith.constant 0 : i32
    %c0_i32_0 = arith.constant 0 : i32
    %c0_i32_1 = arith.constant 0 : i32
    return %c0_i32, %c0_i32_0 : i32, i32
  }
  func.func @transform_3(%arg0: i32) -> (i32, i32) {
    %c0_i32 = arith.constant 0 : i32
    %c0_i32_0 = arith.constant 0 : i32
    %c0_i32_1 = arith.constant 0 : i32
    return %c0_i32, %c0_i32_0 : i32, i32
  }
  func.func @transform_4(%arg0: i32) -> (i32, i32) {
    %c0_i32 = arith.constant 0 : i32
    %c0_i32_0 = arith.constant 0 : i32
    %c0_i32_1 = arith.constant 0 : i32
    return %c0_i32, %c0_i32_0 : i32, i32
  }
}

</mosaic_0001>

<bundles_post_ra>
// kernel: tpu_custom_call.1
= control target key start
LH: loop header
LB: loop body
LE: loop exit
PB: predicated region body
PF: predicated region fallthrough
CT: control target
= control target key end

     0   :  { %9 = vsyncpa [#allocation3], 0  ;;  %s2483_s0 = inlined_call_operand.hbm [shape: f32[4,512], index: 0, kind: input, shape index: {}]   ;;  %s2484_s1 = inlined_call_operand.hbm [shape: f32[4,36], index: 1, kind: input, shape index: {}]   ;;  %s2485_s2 = inlined_call_operand.hbm [shape: f32[4,36], index: 2, kind: input, shape index: {}]   ;;  %s2486_s3 = inlined_call_operand.hbm [shape: f32[4,4], index: 3, kind: input, shape index: {}]   ;;  %s2487_s4 = inlined_call_operand.hbm [shape: f32[4,512], index: 4, kind: output, shape index: {}]  }
   0x1   :  { %10 = vsyncpa [#allocation6], 0 }
   0x2   :  { %11 = vsyncpa [#allocation9], 0  ;;  %s29_s17 = sshll.u32 %s2484_s1, 4  ;;  %s30_s17 = int_to_ptr.hbm [resolvable:$true] %s29_s17 }
   0x3   :  { %12 = vsyncpa [#allocation4], 0  ;;  %s1525_s18 = smov [#allocation5]   ;;  %s18_s22 = sshll.u32 %s2483_s0, 4  ;;  %s19_s22 = int_to_ptr.hbm [resolvable:$true] %s18_s22 }
   0x4   :  { %s31_s19 = sshll.u32 %s1525_s18, 4  ;;  %s1526_s23 = smov [#allocation2]   ;;  %s32_s19 = int_to_ptr.vmem [resolvable:$true] %s31_s19 }
   0x5   :  { %34 = dma.hbm_to_vmem [thread:$0]  %s30_s17, 64, %s32_s19, [#allocation6]  }
   0x6   :  { %s20_s24 = sshll.u32 %s1526_s23, 4  ;;  %s40_s27 = sshll.u32 %s2485_s2, 4  ;;  %s21_s24 = int_to_ptr.vmem [resolvable:$true] %s20_s24  ;;  %s41_s27 = int_to_ptr.hbm [resolvable:$true] %s40_s27 }
   0x7   :  { %23 = dma.hbm_to_vmem [thread:$0]  %s19_s22, 256, %s21_s24, [#allocation3]  }
   0x8   :  { %s51_s29 = sshll.u32 %s2486_s3, 4  ;;  %s1527_s30 = smov [#allocation7]   ;;  %s52_s29 = int_to_ptr.hbm [resolvable:$true] %s51_s29 }
   0x9   :  { %s42_s5 = sshll.u32 %s1527_s30, 4  ;;  %s1528_s0 = smov [#allocation8]   ;;  %s43_s5 = int_to_ptr.vmem [resolvable:$true] %s42_s5 }
   0xa   :  { %45 = dma.hbm_to_vmem [thread:$0]  %s41_s27, 64, %s43_s5, [#allocation6]  }
   0xb   :  { %s53_s6 = sshll.u32 %s1528_s0, 4  ;;  %s54_s6 = int_to_ptr.vmem [resolvable:$true] %s53_s6 }
   0xc   :  { %56 = dma.hbm_to_vmem [thread:$0]  %s52_s29, 64, %s54_s6, [#allocation9]  }
   0xd   :  { %1517 = dma.done.wait [#allocation3], 256  }
   0xe   :  { %1518 = vsyncadd [#allocation3], 4294967040 }
   0xf   :  { %1519 = dma.done.wait [#allocation6], 128  }
  0x10   :  { %1520 = vsyncadd [#allocation6], 4294967168 }
  0x11   :  { %1521 = dma.done.wait [#allocation9], 64  }
  0x12   :  { %1522 = vsyncadd [#allocation9], 4294967232  ;;  %v1580_v0 = vld [vmem:[#allocation2] sm:$0xff]  ;;  %v1582_v1 = vld [vmem:[#allocation2 + $0x8] sm:$0xff]  ;;  %s1529_s2 = smov 17   ;;  %s1530_s3 = smov 16   ;;  %v73_v44 = vlaneseq }
  0x13   :  { %2498 = vst [vmem:[#allocation15_spill] sm:$0xff] %v1580_v0  ;;  %s1531_s7 = smov 15   ;;  %s1532_s8 = smov 1   ;;  %vm426_vm9 = vcmask 1043456  }
  0x14   :  { %2499 = vst [vmem:[#allocation16_spill] sm:$0xff] %v1582_v1  ;;  %s1533_s9 = smov 127   ;;  %s1534_s10 = smov 113   ;;  %v1672_v48 = vand.u32 127, %v73_v44 }
  0x15   :  { %143 = vst [vmem:[#allocation1] ss:$2 sm:$0xff] %v1580_v0  ;;  %s1535_s11 = smov 112   ;;  %s1536_s12 = smov 111  }
  0x16   :  { %145 = vst [vmem:[#allocation1 + $0x10] ss:$2 sm:$0xff] %v1582_v1  ;;  %v76_v49 = vadd.s32 256, %v1672_v48  ;;  %v77_v54 = vadd.s32 384, %v1672_v48  ;;  %v75_v58 = vadd.s32 128, %v1672_v48  ;;  %v78_v61 = vand.u32 255, %v1672_v48 }
  0x17   :  { %vm190_vm2 = vcmp.lt.s32.totalorder %v1672_v48, 16  ;;  %vm246_vm3 = vcmp.lt.s32.totalorder %v1672_v48, 1  ;;  %vm162_vm7 = vcmp.lt.s32.totalorder %v1672_v48, 17  ;;  %vm274_vm10 = vcmp.lt.s32.totalorder %v1672_v48, 127  ;;  %s1542_s13 = smov [#allocation10]   ;;  %s1318_s17 = sshll.u32 %s2487_s4, 4  ;;  %s1319_s17 = int_to_ptr.hbm [resolvable:$true] %s1318_s17 }
  0x18   :  { %v80_v53 = vand.u32 255, %v76_v49  ;;  %v81_v57 = vand.u32 255, %v77_v54  ;;  %vm218_vm12 = vcmp.lt.s32.totalorder %v1672_v48, 15  ;;  %s1316_s14 = sshll.u32 %s1542_s13, 4  ;;  %s1317_s14 = int_to_ptr.vmem [resolvable:$true] %s1316_s14 }
  0x1a   :  { %v84_v55 = vshra.s32 %v80_v53, 4  ;;  %v88_v56 = vand.u32 15, %v80_v53  ;;  %v89_v60 = vand.u32 15, %v81_v57 }
  0x1c   :  { %v147_v2 = vld.sshfl [vmem:[#allocation1 + $0x8] sm:$0xff pattern:$0x75316420]  ;;  %v1586_v3 = vld.sshfl [vmem:[#allocation1] sm:$0xff pattern:$0x75316420] }
  0x1d   :  { %156 = vrot.lane.b32.xlu2 %v147_v2, %s1529_s2  ;;  %171 = vst [vmem:[#allocation1] ss:$2 sm:$0xff] %v1580_v0  ;;  %v148_v4 = vld.sshfl [vmem:[#allocation1 + $0x10] sm:$0xff pattern:$0x75316420]  ;;  %vm92_vm0 = vcmp.ge.s32.totalorder %v84_v55, 1 }
  0x1e   :  { %v1590_v5 = vld.sshfl [vmem:[#allocation1 + $0x18] sm:$0xff pattern:$0x75316420]  ;;  %158 = vrot.lane.b32.xlu0 %v148_v4, %s1529_s2  ;;  %vm108_vm1 = vcmp.ge.s32.totalorder %v88_v56, 1  ;;  %v85_v2 = vshra.s32 %v81_v57, 4  ;;  %vm116_vm4 = vcmp.le.s32.totalorder %v88_v56, 14 }
  0x1f   :  { %173 = vst [vmem:[#allocation1 + $0x10] ss:$2 sm:$0xff] %v1582_v1  ;;  %v1537_v4 = vmov 0.0   ;;  %vm109_vm5 = vcmp.ge.s32.totalorder %v89_v60, 1  ;;  %vm117_vm6 = vcmp.le.s32.totalorder %v89_v60, 14  ;;  %vm100_vm14 = vcmp.le.s32.totalorder %v84_v55, 14 }
  0x20   :  { %vm93_vm8 = vcmp.ge.s32.totalorder %v85_v2, 1 }
  0x24   :  { %v175_v6 = vld.sshfl [vmem:[#allocation1 + $0x8] sm:$0xff pattern:$0x75316420]  ;;  %v1594_v7 = vld.sshfl [vmem:[#allocation1] sm:$0xff pattern:$0x75316420] }
  0x25   :  { %184 = vrot.lane.b32.xlu1 %v175_v6, %s1530_s3  ;;  %199 = vst [vmem:[#allocation1] ss:$2 sm:$0xff] %v1580_v0  ;;  %v1696_v6 = vsel %vm108_vm1, 1.0, %v1537_v4 }
  0x26   :  { %v176_v8 = vld.sshfl [vmem:[#allocation1 + $0x10] sm:$0xff pattern:$0x75316420]  ;;  %v177_v9 = vld.sshfl [vmem:[#allocation1 + $0x18] sm:$0xff pattern:$0x75316420] }
  0x27   :  { %201 = vst [vmem:[#allocation1 + $0x10] ss:$2 sm:$0xff] %v1582_v1  ;;  %186 = vrot.lane.b32.xlu2 %v176_v8, %s1530_s3 }
  0x2c   :  { %v203_v10 = vld.sshfl [vmem:[#allocation1 + $0x8] sm:$0xff pattern:$0x75316420]  ;;  %v1600_v11 = vld.sshfl [vmem:[#allocation1] sm:$0xff pattern:$0x75316420] }
  0x2d   :  { %188 = vrot.lane.b32.xlu1 %v177_v9, %s1530_s3  ;;  %212 = vrot.lane.b32.xlu0 %v203_v10, %s1531_s7  ;;  %227 = vst [vmem:[#allocation1] ss:$2 sm:$0xff] %v1580_v0  ;;  %v1704_v9 = vsel %vm116_vm4, 1.0, %v1537_v4  ;;  %vm101_vm4 = vcmp.le.s32.totalorder %v85_v2, 14 }
  0x2e   :  { %v204_v12 = vld.sshfl [vmem:[#allocation1 + $0x10] sm:$0xff pattern:$0x75316420]  ;;  %v205_v13 = vld.sshfl [vmem:[#allocation1 + $0x18] sm:$0xff pattern:$0x75316420] }
  0x2f   :  { %229 = vst [vmem:[#allocation1 + $0x10] ss:$2 sm:$0xff] %v1582_v1  ;;  %216 = vrot.lane.b32.xlu2 %v205_v13, %s1531_s7  ;;  %v1713_v13 = vsel %vm109_vm5, 1.0, %v1537_v4  ;;  %vm330_vm5 = vcmp.lt.s32.totalorder %v1672_v48, 112  ;;  %v1781_v57 = vsel %vm101_vm4, 1.0, %v1537_v4 }
  0x34   :  { %v230_v14 = vld.sshfl [vmem:[#allocation1] sm:$0xff pattern:$0x75316420]  ;;  %v231_v15 = vld.sshfl [vmem:[#allocation1 + $0x8] sm:$0xff pattern:$0x75316420] }
  0x35   :  { %214 = vrot.lane.b32.xlu1 %v204_v12, %s1531_s7  ;;  %238 = vrot.lane.b32.xlu0 %v230_v14, %s1532_s8  ;;  %255 = vst [vmem:[#allocation1] ss:$2 sm:$0xff] %v1580_v0 }
  0x36   :  { %v232_v16 = vld.sshfl [vmem:[#allocation1 + $0x10] sm:$0xff pattern:$0x75316420]  ;;  %v233_v17 = vld.sshfl [vmem:[#allocation1 + $0x18] sm:$0xff pattern:$0x75316420] }
  0x37   :  { %242 = vrot.lane.b32.xlu2 %v232_v16, %s1532_s8  ;;  %257 = vst [vmem:[#allocation1 + $0x10] ss:$2 sm:$0xff] %v1582_v1  ;;  %v1722_v16 = vsel %vm117_vm6, 1.0, %v1537_v4  ;;  %vm302_vm6 = vcmp.lt.s32.totalorder %v1672_v48, 113 }
  0x3c   :  { %v258_v18 = vld.sshfl [vmem:[#allocation1] sm:$0xff pattern:$0x75316420]  ;;  %v259_v19 = vld.sshfl [vmem:[#allocation1 + $0x8] sm:$0xff pattern:$0x75316420] }
  0x3d   :  { %240 = vrot.lane.b32.xlu1 %v231_v15, %s1532_s8  ;;  %266 = vrot.lane.b32.xlu0 %v258_v18, %s1533_s9  ;;  %283 = vst [vmem:[#allocation1] ss:$2 sm:$0xff] %v1580_v0 }
  0x3e   :  { %v260_v20 = vld.sshfl [vmem:[#allocation1 + $0x10] sm:$0xff pattern:$0x75316420]  ;;  %v261_v21 = vld.sshfl [vmem:[#allocation1 + $0x18] sm:$0xff pattern:$0x75316420] }
  0x3f   :  { %244 = vrot.lane.b32.xlu2 %v233_v17, %s1532_s8  ;;  %285 = vst [vmem:[#allocation1 + $0x10] ss:$2 sm:$0xff] %v1582_v1 }
  0x44   :  { %v286_v22 = vld.sshfl [vmem:[#allocation1] sm:$0xff pattern:$0x75316420]  ;;  %v287_v23 = vld.sshfl [vmem:[#allocation1 + $0x8] sm:$0xff pattern:$0x75316420] }
  0x45   :  { %268 = vrot.lane.b32.xlu0 %v259_v19, %s1533_s9  ;;  %311 = vst [vmem:[#allocation1] ss:$2 sm:$0xff] %v1580_v0  ;;  %v1731_v19 = vsel %vm93_vm8, 1.0, %v1537_v4 }
  0x46   :  { %v289_v24 = vld.sshfl [vmem:[#allocation1 + $0x18] sm:$0xff pattern:$0x75316420]  ;;  %v288_v25 = vld.sshfl [vmem:[#allocation1 + $0x10] sm:$0xff pattern:$0x75316420] }
  0x47   :  { %270 = vrot.lane.b32.xlu2 %v260_v20, %s1533_s9  ;;  %300 = vrot.lane.b32.xlu1 %v289_v24, %s1534_s10  ;;  %313 = vst [vmem:[#allocation1 + $0x10] ss:$2 sm:$0xff] %v1582_v1 }
  0x4c   :  { %v314_v26 = vld.sshfl [vmem:[#allocation1] sm:$0xff pattern:$0x75316420]  ;;  %v315_v27 = vld.sshfl [vmem:[#allocation1 + $0x8] sm:$0xff pattern:$0x75316420] }
  0x4d   :  { %298 = vrot.lane.b32.xlu0 %v288_v25, %s1534_s10  ;;  %339 = vst [vmem:[#allocation1] ss:$2 sm:$0xff] %v1580_v0 }
  0x4e   :  { %v316_v28 = vld.sshfl [vmem:[#allocation1 + $0x10] sm:$0xff pattern:$0x75316420]  ;;  %v317_v29 = vld.sshfl [vmem:[#allocation1 + $0x18] sm:$0xff pattern:$0x75316420] }
  0x4f   :  { %272 = vrot.lane.b32.xlu2 %v261_v21, %s1533_s9  ;;  %294 = vrot.lane.b32.xlu1 %v286_v22, %s1534_s10  ;;  %341 = vst [vmem:[#allocation1 + $0x10] ss:$2 sm:$0xff] %v1582_v1  ;;  %v82_v22 = vshra.s32 %v78_v61, 4 }
  0x51   :  { %vm98_vm1 = vcmp.le.s32.totalorder %v82_v22, 14  ;;  %vm90_vm8 = vcmp.ge.s32.totalorder %v82_v22, 1 }
  0x52   :  { %v1773_v55 = vsel %vm98_vm1, 1.0, %v1537_v4 }
  0x54   :  { %v342_v30 = vld.sshfl [vmem:[#allocation1] sm:$0xff pattern:$0x75316420]  ;;  %v343_v31 = vld.sshfl [vmem:[#allocation1 + $0x8] sm:$0xff pattern:$0x75316420] }
  0x55   :  { %326 = vrot.lane.b32.xlu0 %v316_v28, %s1535_s11  ;;  %391 = vst [vmem:[#allocation1] ss:$2 sm:$0xff] %v1580_v0 }
  0x56   :  { %v344_v32 = vld.sshfl [vmem:[#allocation1 + $0x10] sm:$0xff pattern:$0x75316420]  ;;  %v345_v33 = vld.sshfl [vmem:[#allocation1 + $0x18] sm:$0xff pattern:$0x75316420] }
  0x57   :  { %296 = vrot.lane.b32.xlu1 %v287_v23, %s1534_s10  ;;  %322 = vrot.lane.b32.xlu2 %v314_v26, %s1535_s11  ;;  %393 = vst [vmem:[#allocation1 + $0x10] ss:$2 sm:$0xff] %v1582_v1  ;;  %v1743_v23 = vmul.f32 %v1722_v16, %v1731_v19 }
  0x59   :  { %2502 = vst [vmem:[#allocation19_spill] sm:$0xff] %v1743_v23 }
  0x5d   :  { %328 = vrot.lane.b32.xlu0 %v317_v29, %s1535_s11 }
  0x5f   :  { %354 = vrot.lane.b32.xlu1 %v344_v32, %s1536_s12  ;;  %324 = vrot.lane.b32.xlu2 %v315_v27, %s1535_s11 }
  0x65   :  { %350 = vrot.lane.b32.xlu0 %v342_v30, %s1536_s12  ;;  %v1757_v30 = vsel %vm100_vm14, 1.0, %v1537_v4  ;;  %vm358_vm14 = vcmp.lt.s32.totalorder %v1672_v48, 111 }
  0x66   :  { %v1778_v56 = vmul.f32 %v1696_v6, %v1757_v30 }
  0x67   :  { %356 = vrot.lane.b32.xlu1 %v345_v33, %s1536_s12  ;;  %182 = vrot.lane.b32.xlu2 %v1594_v7, %s1530_s3  ;;  %v86_v7 = vand.u32 15, %v78_v61 }
  0x69   :  { %vm106_vm11 = vcmp.ge.s32.totalorder %v86_v7, 1  ;;  %vm114_vm15 = vcmp.le.s32.totalorder %v86_v7, 14 }
  0x6a   :  { %v1746_v24 = vsel %vm106_vm11, 1.0, %v1537_v4  ;;  %v1761_v33 = vsel %vm114_vm15, 1.0, %v1537_v4  ;;  %vm2497_vm15 = vcmask 293888  }
  0x6d   :  { %352 = vrot.lane.b32.xlu0 %v343_v31, %s1536_s12 }
  0x6f   :  { %160 = vrot.lane.b32.xlu1 %v1590_v5, %s1529_s2  ;;  %v1693_v5 = vsel %vm92_vm0, 1.0, %v1537_v4 }
  0x70   :  { %v1710_v12 = vmul.f32 %v1696_v6, %v1693_v5  ;;  %v1735_v20 = vmul.f32 %v1704_v9, %v1693_v5 }
  0x72   :  { %2500 = vst [vmem:[#allocation17_spill] sm:$0xff] %v1710_v12 }
  0x73   :  { %2501 = vst [vmem:[#allocation18_spill] sm:$0xff] %v1735_v20 }
  0x75   :  { %210 = vrot.lane.b32.xlu0 %v1600_v11, %s1531_s7 }
  0x77   :  { %154 = vrot.lane.b32.xlu1 %v1586_v3, %s1529_s2  ;;  %v1646_v34 = vpop.permute.xlu2 %156  ;;  %v79_v3 = vand.u32 255, %v75_v58 }
  0x79   :  { %v87_v10 = vand.u32 15, %v79_v3  ;;  %v83_v31 = vshra.s32 %v79_v3, 4 }
  0x7b   :  { %vm107_vm13 = vcmp.ge.s32.totalorder %v87_v10, 1  ;;  %vm115_vm0 = vcmp.le.s32.totalorder %v87_v10, 14  ;;  %vm91_vm11 = vcmp.ge.s32.totalorder %v83_v31, 1 }
  0x7c   :  { %v1754_v29 = vsel %vm107_vm13, 1.0, %v1537_v4  ;;  %v1764_v44 = vsel %vm115_vm0, 1.0, %v1537_v4  ;;  %vm99_vm13 = vcmp.le.s32.totalorder %v83_v31, 14  ;;  %v1826_v22 = vsel %vm91_vm11, 1.0, %v1537_v4 }
  0x81   :  { %v1648_v35 = vpop.permute.xlu2 %186 }
  0x89   :  { %v1654_v38 = vpop.permute.xlu2 %216 }
  0x90   :  { %v1650_v36 = vpop.permute.xlu0 %158 }
  0x91   :  { %v1660_v41 = vpop.permute.xlu2 %242  ;;  %v164_v18 = vsel %vm162_vm7, %v1646_v34, %v1650_v36 }
  0x92   :  { %v169_v26 = vmul.f32 %v164_v18, %v1710_v12 }
  0x97   :  { %v1652_v37 = vpop.permute.xlu1 %184 }
  0x98   :  { %v192_v8 = vsel %vm190_vm2, %v1652_v37, %v1648_v35 }
  0x99   :  { %v1666_v45 = vpop.permute.xlu2 %244  ;;  %v197_v15 = vmul.f32 %v192_v8, %v1693_v5 }
  0x9a   :  { %v247_v14 = vsel %vm246_vm3, %v1660_v41, %v1666_v45 }
  0x9b   :  { %v1739_v21 = vmul.f32 %v247_v14, %v1713_v13  ;;  %v373_v27 = vrot.slane %v197_v15, 4  ;;  %v1814_v14 = vmul.f32 %v1713_v13, %v1781_v57  ;;  %v1817_v15 = vsel %vm90_vm8, 1.0, %v1537_v4 }
  0x9d   :  { %v1786_v60 = vsel %vm426_vm9, %v169_v26, %v373_v27  ;;  %v1829_v26 = vsel %vm99_vm13, 1.0, %v1537_v4 }
  0x9f   :  { %v1656_v39 = vpop.permute.xlu1 %188  ;;  %v1658_v40 = vpop.permute.xlu0 %212 }
  0xa0   :  { %v191_v53 = vsel %vm190_vm2, %v1648_v35, %v1656_v39 }
  0xa1   :  { %v1677_v51 = vpop.permute.xlu2 %270  ;;  %v1797_v2 = vmul.f32 %v191_v53, %v1731_v19 }
  0xa7   :  { %v1662_v42 = vpop.permute.xlu1 %214  ;;  %v1664_v43 = vpop.permute.xlu0 %238 }
  0xa8   :  { %v219_v35 = vsel %vm218_vm12, %v1662_v42, %v1654_v38  ;;  %v220_v61 = vsel %vm218_vm12, %v1658_v40, %v1662_v42  ;;  %v250_v3 = vsel %vm246_vm3, %v1666_v45, %v1664_v43 }
  0xa9   :  { %v1688_v63 = vpop.permute.xlu2 %272  ;;  %v1820_v45 = vmul.f32 %v220_v61, %v1735_v20  ;;  %v1823_v18 = vmul.f32 %v219_v35, %v1743_v23  ;;  %v1832_v27 = vmul.f32 %v250_v3, %v1746_v24  ;;  %v1844_v35 = vmul.f32 %v1704_v9, %v1757_v30 }
  0xaa   :  { %v275_v28 = vsel %vm274_vm10, %v1677_v51, %v1688_v63  ;;  %v1848_v61 = vmul.f32 %v1722_v16, %v1781_v57  ;;  %v1856_v3 = vmul.f32 %v1746_v24, %v1773_v55 }
  0xab   :  { %v281_v54 = vmul.f32 %v275_v28, %v1704_v9 }
  0xad   :  { %v408_v10 = vrot.slane %v281_v54, 4 }
  0xaf   :  { %v1668_v46 = vpop.permute.xlu1 %240  ;;  %v1670_v47 = vpop.permute.xlu0 %266 }
  0xb0   :  { %v278_v42 = vsel %vm274_vm10, %v1688_v63, %v1670_v47  ;;  %v396_v63 = vld.sshfl [vmem:[#allocation1 + $0x10] sm:$0xff pattern:$0x75316420]  ;;  %v248_v28 = vsel %vm246_vm3, %v1668_v46, %v1660_v41  ;;  %v249_v41 = vsel %vm246_vm3, %v1664_v43, %v1668_v46 }
  0xb1   :  { %v323_v25 = vpop.permute.xlu2 %322  ;;  %v282_v54 = vmul.f32 %v278_v42, %v1722_v16  ;;  %v253_v42 = vmul.f32 %v248_v28, %v1696_v6 }
  0xb7   :  { %v1675_v50 = vpop.permute.xlu0 %268 }
  0xb9   :  { %v1679_v52 = vpop.permute.xlu1 %300  ;;  %v325_v31 = vpop.permute.xlu2 %324 }
  0xba   :  { %v333_v32 = vsel %vm330_vm5, %v323_v25, %v325_v31 }
  0xbf   :  { %v1683_v59 = vpop.permute.xlu0 %298 }
  0xc0   :  { %v303_v43 = vsel %vm302_vm6, %v1683_v59, %v1679_v52 }
  0xc1   :  { %v1686_v62 = vpop.permute.xlu1 %294 }
  0xc2   :  { %v306_v46 = vsel %vm302_vm6, %v1679_v52, %v1686_v62  ;;  %v276_v52 = vsel %vm274_vm10, %v1675_v50, %v1677_v51  ;;  %v1899_v51 = vmul.f32 %v1761_v33, %v1773_v55 }
  0xc7   :  { %v1706_v11 = vpop.permute.xlu0 %326 }
  0xc8   :  { %v332_v28 = vsel %vm330_vm5, %v325_v31, %v1706_v11  ;;  %v335_v31 = vmul.f32 %v333_v32, %v1773_v55 }
  0xc9   :  { %v1724_v17 = vpop.permute.xlu1 %296 }
  0xcf   :  { %v329_v49 = vpop.permute.xlu0 %328 }
  0xd0   :  { %v331_v7 = vsel %vm330_vm5, %v1706_v11, %v329_v49  ;;  %v334_v8 = vsel %vm330_vm5, %v329_v49, %v323_v25  ;;  %v385_v11 = vrot.slane %v253_v42, 4 }
  0xd1   :  { %v1783_v58 = vpop.permute.xlu1 %354  ;;  %v337_v49 = vmul.f32 %v331_v7, %v1757_v30  ;;  %v338_v53 = vmul.f32 %v334_v8, %v1781_v57  ;;  %v1860_v7 = vmul.f32 %v1754_v29, %v1829_v26  ;;  %v437_v8 = vsel %vm426_vm9, %v396_v63, %v408_v10 }
  0xd2   :  { %v409_v63 = vrot.slane %v282_v54, 4  ;;  %v397_v54 = vld.sshfl [vmem:[#allocation1 + $0x18] sm:$0xff pattern:$0x75316420] }
  0xd3   :  { %v420_v0 = vrot.slane %v337_v49, 4  ;;  %v421_v12 = vrot.slane %v338_v53, 4  ;;  %v277_v49 = vsel %vm274_vm10, %v1670_v47, %v1675_v50  ;;  %v310_v53 = vmul.f32 %v306_v46, %v1814_v14 }
  0xd4   :  { %v336_v47 = vmul.f32 %v332_v28, %v1829_v26  ;;  %v305_v50 = vsel %vm302_vm6, %v1686_v62, %v1724_v17  ;;  %v279_v42 = vmul.f32 %v277_v49, %v1761_v33  ;;  %v438_v46 = vsel %vm426_vm9, %v397_v54, %v409_v63  ;;  %v183_v62 = vpop.permute.xlu2 %182 }
  0xd5   :  { %v280_v28 = vmul.f32 %v276_v52, %v1764_v44  ;;  %v418_v49 = vrot.slane %v335_v31, 4  ;;  %v193_v31 = vsel %vm190_vm2, %v183_v62, %v1652_v37 }
  0xd6   :  { %v419_v54 = vrot.slane %v336_v47, 4  ;;  %v194_v47 = vsel %vm190_vm2, %v1656_v39, %v183_v62 }
  0xd7   :  { %v351_v4 = vpop.permute.xlu0 %350 }
  0xd9   :  { %v357_v1 = vpop.permute.xlu1 %356 }
  0xda   :  { %v359_v10 = vsel %vm358_vm14, %v1783_v58, %v357_v1  ;;  %v362_v25 = vsel %vm358_vm14, %v357_v1, %v351_v4  ;;  %v309_v1 = vmul.f32 %v303_v43, %v1778_v56  ;;  %v1916_v43 = vmul.f32 %v1713_v13, %v1731_v19 }
  0xdb   :  { %v365_v23 = vmul.f32 %v359_v10, %v1844_v35  ;;  %v366_v20 = vmul.f32 %v362_v25, %v1848_v61  ;;  %v1903_v10 = vmul.f32 %v1764_v44, %v1829_v26 }
  0xdc   :  { %v441_v32 = vsel %vm426_vm9, %v309_v1, %v420_v0  ;;  %v304_v0 = vsel %vm302_vm6, %v1724_v17, %v1683_v59  ;;  %v307_v1 = vmul.f32 %v305_v50, %v1856_v3  ;;  %v433_v17 = vsel %vm426_vm9, %v1820_v45, %v385_v11 }
  0xdd   :  { %1334 = vmatpush.msk.msra.mxu2 %vm426_vm9, %v365_v23  ;;  %1336 = vmatpush.msk.msra.mxu3 %vm426_vm9, %v366_v20  ;;  %v442_v23 = vsel %vm426_vm9, %v310_v53, %v421_v12  ;;  %v374_v20 = vrot.slane %v1797_v2, 4  ;;  %v252_v45 = vmul.f32 %v249_v41, %v1754_v29  ;;  %v308_v11 = vmul.f32 %v304_v0, %v1860_v7 }
  0xde   :  { %v439_v39 = vsel %vm426_vm9, %v307_v1, %v418_v49  ;;  %v1961_v41 = vmul.f32 %v1764_v44, %v1826_v22  ;;  %v383_v49 = vrot.slane %v1832_v27, 4 }
  0xdf   :  { %512 = vmatpush.msra.mxu2 %v441_v32  ;;  %532 = vmatpush.msra.mxu3 %v442_v23  ;;  %v353_v25 = vpop.permute.xlu0 %352  ;;  %v1957_v32 = vmul.f32 %v1761_v33, %v1817_v15  ;;  %v395_v23 = vld.sshfl [vmem:[#allocation1 + $0x8] sm:$0xff pattern:$0x75316420]  ;;  %v384_v1 = vrot.slane %v252_v45, 4 }
  0xe0   :  { %v360_v12 = vsel %vm358_vm14, %v353_v25, %v1783_v58  ;;  %v361_v2 = vsel %vm358_vm14, %v351_v4, %v353_v25  ;;  %v2503_v58 = vrot.slane %v1739_v21, 4  ;;  %v407_v21 = vrot.slane %v280_v28, 4 }
  0xe1   :  { %513 = vmatpush.msra.mxu2 %v437_v8  ;;  %v161_v63 = vpop.permute.xlu1 %160  ;;  %533 = vmatpush.msra.mxu3 %v438_v46  ;;  %v363_v52 = vmul.f32 %v361_v2, %v1899_v51  ;;  %v364_v53 = vmul.f32 %v360_v12, %v1903_v10  ;;  %v406_v8 = vrot.slane %v279_v42, 4  ;;  %v195_v42 = vmul.f32 %v194_v47, %v1817_v15 }
  0xe2   :  { %v163_v59 = vsel %vm162_vm7, %v1650_v36, %v161_v63  ;;  %v434_v4 = vsel %vm426_vm9, %v1823_v18, %v2503_v58  ;;  %v394_v36 = vld.sshfl [vmem:[#allocation1] sm:$0xff pattern:$0x75316420]  ;;  %v443_v18 = vld [vmem:[#allocation5] sm:$0xf]  ;;  %v196_v46 = vmul.f32 %v193_v31, %v1826_v22  ;;  %v1972_v25 = vmul.f32 %v1754_v29, %v1826_v22 }
  0xe3   :  { %v170_v50 = vmul.f32 %v163_v59, %v1916_v43  ;;  %514 = vmatpush.msra.mxu2 %v433_v17  ;;  %534 = vmatpush.msra.mxu3 %v434_v4  ;;  %v435_v62 = vsel %vm426_vm9, %v394_v36, %v406_v8  ;;  %v436_v2 = vsel %vm426_vm9, %v395_v23, %v407_v21  ;;  %v371_v59 = vrot.slane %v195_v42, 4 }
  0xe4   :  { %1330 = vmatpush.msk.msra.mxu0 %vm426_vm9, %v363_v52  ;;  %1332 = vmatpush.msk.msra.mxu1 %vm426_vm9, %v364_v53  ;;  %2505 = vst [vmem:[#allocation21_spill] sm:$0xff] %v1972_v25 }
  0xe5   :  { %515 = vmatpush.msra.mxu2 %v1786_v60  ;;  %v430_v37 = vsel %vm426_vm9, %v170_v50, %v374_v20  ;;  %v440_v60 = vsel %vm426_vm9, %v308_v11, %v419_v54  ;;  %v1968_v20 = vmul.f32 %v1746_v24, %v1817_v15 }
  0xe6   :  { %535 = vmatpush.msra.mxu3 %v430_v37  ;;  %472 = vmatpush.msra.mxu0 %v439_v39 }
  0xe7   :  { %492 = vmatpush.msra.mxu1 %v440_v60  ;;  %2504 = vst [vmem:[#allocation20_spill] sm:$0xff] %v1968_v20  ;;  %v211_v28 = vpop.permute.xlu0 %210  ;;  %1335 = vmatmul.msk.f32.vlgmr.msra.gmra.mxu2 %vm2497_vm15, %v443_v18 }
  0xe8   :  { %v221_v0 = vsel %vm218_vm12, %v211_v28, %v1658_v40  ;;  %v222_v12 = vsel %vm218_vm12, %v1654_v38, %v211_v28  ;;  %473 = vmatpush.msra.mxu0 %v435_v62  ;;  %1337 = vmatmul.msk.f32.vlgmr.msra.gmra.mxu3 %vm2497_vm15, %v443_v18  ;;  %v372_v40 = vrot.slane %v196_v46, 4 }
  0xe9   :  { %v155_v52 = vpop.permute.xlu1 %154  ;;  %v223_v53 = vmul.f32 %v222_v12, %v1957_v32  ;;  %v224_v54 = vmul.f32 %v221_v0, %v1961_v41  ;;  %493 = vmatpush.msra.mxu1 %v436_v2 }
  0xea   :  { %v165_v38 = vsel %vm162_vm7, %v155_v52, %v1646_v34  ;;  %v166_v17 = vsel %vm162_vm7, %v161_v63, %v155_v52 }
  0xeb   :  { %v167_v58 = vmul.f32 %v166_v17, %v1968_v20  ;;  %v168_v27 = vmul.f32 %v165_v38, %v1972_v25  ;;  %v431_v4 = vsel %vm426_vm9, %v223_v53, %v383_v49  ;;  %v432_v8 = vsel %vm426_vm9, %v224_v54, %v384_v1 }
  0xec   :  { %474 = vmatpush.msra.mxu0 %v431_v4  ;;  %494 = vmatpush.msra.mxu1 %v432_v8  ;;  %v1539_v4 = vmov 0  }
  0xed   :  { %v427_v31 = vsel %vm426_vm9, %v167_v58, %v371_v59  ;;  %v428_v47 = vsel %vm426_vm9, %v168_v27, %v372_v40  ;;  %v1538_v58 = vmov 1   ;;  %v2008_v27 = vld [vmem:[#allocation8] sm:$0xf] }
  0xee   :  { %475 = vmatpush.msra.mxu0 %v427_v31  ;;  %495 = vmatpush.msra.mxu1 %v428_v47  ;;  %2506 = vst [vmem:[#allocation22_spill] sm:$0xff] %v2008_v27 }
  0xef   :  { %1331 = vmatmul.msk.f32.vlgmr.msra.gmra.mxu0 %vm2497_vm15, %v443_v18  ;;  %1333 = vmatmul.msk.f32.vlgmr.msra.gmra.mxu1 %vm2497_vm15, %v443_v18 }
  0xf0   :  { %1372 = vset.pattern.permute.xlu1 %v1538_v58 }
  0xf1   :  { %591 = vperm.xlu1 %1372, %v2008_v27  }
  0xf9   :  { %1373 = vset.pattern.permute.xlu1 %v1539_v4 }
 0x16a   :  { %v517_v34 = vpop.f32.mrf.mxu2 }
 0x16b   :  { %v537_v63 = vpop.f32.mrf.mxu3  ;;  %v543_v11 = vsel %vm426_vm9, %v517_v34, 0.0 }
 0x16c   :  { %v477_v50 = vpop.f32.mrf.mxu0  ;;  %v497_v36 = vpop.f32.mrf.mxu1  ;;  %v545_v39 = vsel %vm426_vm9, %v537_v63, 0.0 }
 0x16d   :  { %v540_v45 = vsel %vm426_vm9, %v477_v50, 0.0  ;;  %v541_v21 = vsel %vm426_vm9, %v497_v36, 0.0 }
 0x16e   :  { %v542_v37 = vadd.f32 %v541_v21, %v540_v45 }
 0x170   :  { %v544_v23 = vadd.f32 %v543_v11, %v542_v37 }
 0x172   :  { %v546_v42 = vadd.f32 %v545_v39, %v544_v23  ;;  %v592_v39 = vpop.permute.xlu1 %591 }
 0x174   :  { %547 = vadd.xlane.f32.xlu2 %v546_v42 }
 0x1e7   :  { %v548_v46 = vpop.xlane.xlu2 %547 }
 0x1e8   :  { %v549_v60 = vmul.f32 0.001953125, %v548_v46 }
 0x1ea   :  { %v550_v28 = vsub.f32 %v477_v50, %v549_v60  ;;  %v551_v18 = vsub.f32 %v497_v36, %v549_v60  ;;  %v552_v62 = vsub.f32 %v517_v34, %v549_v60  ;;  %v553_v0 = vsub.f32 %v537_v63, %v549_v60 }
 0x1ec   :  { %v554_v12 = vmul.f32 %v550_v28, %v550_v28  ;;  %v555_v2 = vmul.f32 %v551_v18, %v551_v18  ;;  %v556_v49 = vmul.f32 %v552_v62, %v552_v62  ;;  %v557_v1 = vmul.f32 %v553_v0, %v553_v0 }
 0x1ee   :  { %v558_v52 = vsel %vm426_vm9, %v554_v12, 0.0  ;;  %v559_v53 = vsel %vm426_vm9, %v555_v2, 0.0  ;;  %v561_v59 = vsel %vm426_vm9, %v556_v49, 0.0  ;;  %v563_v38 = vsel %vm426_vm9, %v557_v1, 0.0 }
 0x1ef   :  { %v560_v54 = vadd.f32 %v559_v53, %v558_v52 }
 0x1f1   :  { %v562_v40 = vadd.f32 %v561_v59, %v560_v54 }
 0x1f3   :  { %v564_v17 = vadd.f32 %v563_v38, %v562_v40 }
 0x1f5   :  { %565 = vadd.xlane.f32.xlu0 %v564_v17 }
 0x268   :  { %v566_v8 = vpop.xlane.xlu0 %565 }
 0x269   :  { %v567_v31 = vmul.f32 0.001953125, %v566_v8 }
 0x26b   :  { %v568_v47 = vadd.f32 1e-05, %v567_v31 }
 0x26d   :  { %1377 = vrsqrt.f32 %v568_v47  ;;  %vm575_vm1 = vweird.f32 %v568_v47 }
 0x273   :  { %v1378_v34 = vpop.eup %1377 }
 0x274   :  { %v570_v63 = vmul.f32 %v1378_v34, %v568_v47  ;;  %vm576_vm0 = vweird.f32 %v1378_v34 }
 0x275   :  { %vm577_vm4 = vmor %vm575_vm1, %vm576_vm0 }
 0x276   :  { %v571_v50 = vmul.f32 %v1378_v34, %v570_v63 }
 0x278   :  { %v572_v36 = vmul.f32 0.5, %v571_v50 }
 0x27a   :  { %v573_v45 = vsub.f32 1.5, %v572_v36 }
 0x27c   :  { %v574_v21 = vmul.f32 %v1378_v34, %v573_v45 }
 0x27e   :  { %v578_v11 = vsel %vm577_vm4, %v1378_v34, %v574_v21 }
 0x27f   :  { %v579_v37 = vmul.f32 %v578_v11, %v2008_v27 }
 0x281   :  { %582 = vperm.xlu1 %1373, %v579_v37  }
 0x2f3   :  { %v583_v23 = vpop.permute.xlu1 %582 }
 0x2f4   :  { %v585_v42 = vmul.f32 %v583_v23, %v550_v28  ;;  %v586_v46 = vmul.f32 %v583_v23, %v551_v18  ;;  %v587_v60 = vmul.f32 %v583_v23, %v552_v62  ;;  %v588_v12 = vmul.f32 %v583_v23, %v553_v0 }
 0x2f6   :  { %v2012_v2 = vadd.f32 %v592_v39, %v585_v42  ;;  %v2014_v49 = vadd.f32 %v592_v39, %v586_v46  ;;  %v2016_v1 = vadd.f32 %v592_v39, %v587_v60  ;;  %v2018_v52 = vadd.f32 %v592_v39, %v588_v12 }
 0x2f8   :  { %v2021_v53 = vmul.f32 0.70710677, %v2012_v2  ;;  %v2024_v54 = vmul.f32 0.70710677, %v2014_v49  ;;  %v2027_v59 = vmul.f32 0.70710677, %v2016_v1 }
 0x2f9   :  { %v2030_v28 = vmul.f32 0.70710677, %v2018_v52 }
 0x2fa   :  { %v606_v18 = vmul.f32 %v2021_v53, %v2021_v53  ;;  %v646_v62 = vmul.f32 %v2024_v54, %v2024_v54  ;;  %v686_v0 = vmul.f32 %v2027_v59, %v2027_v59 }
 0x2fb   :  { %v726_v40 = vmul.f32 %v2030_v28, %v2030_v28 }
 0x2fc   :  { %v2040_v38 = vmin.f32 %v606_v18, 16.0  ;;  %v2042_v17 = vmin.f32 %v646_v62, 16.0  ;;  %v2044_v58 = vmin.f32 %v686_v0, 16.0 }
 0x2fd   :  { %v2047_v8 = vmin.f32 %v726_v40, 16.0 }
 0x2fe   :  { %v619_v4 = vmul.f32 3.8918573e-05, %v2040_v38  ;;  %v659_v31 = vmul.f32 3.8918573e-05, %v2042_v17  ;;  %v688_v47 = vmul.f32 2.1237322e-06, %v2044_v58 }
 0x2ff   :  { %v699_v34 = vmul.f32 3.8918573e-05, %v2044_v58  ;;  %v728_v11 = vmul.f32 2.1237322e-06, %v2047_v8  ;;  %v739_v42 = vmul.f32 3.8918573e-05, %v2047_v8 }
 0x300   :  { %v620_v63 = vadd.f32 0.001143296, %v619_v4  ;;  %v660_v50 = vadd.f32 0.001143296, %v659_v31  ;;  %v689_v36 = vadd.f32 0.00028619796, %v688_v47 }
 0x301   :  { %v700_v45 = vadd.f32 0.001143296, %v699_v34  ;;  %v608_v60 = vmul.f32 2.1237322e-06, %v2040_v38  ;;  %v729_v4 = vadd.f32 0.00028619796, %v728_v11 }
 0x302   :  { %v621_v21 = vmul.f32 %v620_v63, %v2040_v38  ;;  %v661_v37 = vmul.f32 %v660_v50, %v2042_v17  ;;  %v690_v39 = vmul.f32 %v689_v36, %v2044_v58  ;;  %v740_v31 = vadd.f32 0.001143296, %v739_v42 }
 0x303   :  { %v701_v23 = vmul.f32 %v700_v45, %v2044_v58  ;;  %v609_v63 = vadd.f32 0.00028619796, %v608_v60 }
 0x304   :  { %v622_v46 = vadd.f32 0.014752088, %v621_v21  ;;  %v662_v12 = vadd.f32 0.014752088, %v661_v37  ;;  %v691_v0 = vadd.f32 0.0036580483, %v690_v39  ;;  %v741_v36 = vmul.f32 %v740_v31, %v2047_v8 }
 0x305   :  { %v702_v18 = vadd.f32 0.014752088, %v701_v23  ;;  %v730_v23 = vmul.f32 %v729_v4, %v2047_v8  ;;  %v610_v11 = vmul.f32 %v609_v63, %v2040_v38 }
 0x306   :  { %v623_v62 = vmul.f32 %v622_v46, %v2040_v38  ;;  %v663_v34 = vmul.f32 %v662_v12, %v2042_v17  ;;  %v692_v21 = vmul.f32 %v691_v0, %v2044_v58  ;;  %v742_v39 = vadd.f32 0.014752088, %v741_v36 }
 0x307   :  { %v703_v40 = vmul.f32 %v702_v18, %v2044_v58  ;;  %v731_v31 = vadd.f32 0.0036580483, %v730_v23  ;;  %v611_v4 = vadd.f32 0.0036580483, %v610_v11  ;;  %v648_v23 = vmul.f32 2.1237322e-06, %v2042_v17 }
 0x308   :  { %v624_v47 = vadd.f32 0.112945676, %v623_v62  ;;  %v664_v18 = vadd.f32 0.112945676, %v663_v34  ;;  %v743_v12 = vmul.f32 %v742_v39, %v2047_v8  ;;  %v693_v62 = vadd.f32 0.05243302, %v692_v21 }
 0x309   :  { %v704_v50 = vadd.f32 0.112945676, %v703_v40  ;;  %v732_v63 = vmul.f32 %v731_v31, %v2047_v8  ;;  %v612_v21 = vmul.f32 %v611_v4, %v2040_v38 }
 0x30a   :  { %v625_v45 = vmul.f32 %v624_v47, %v2040_v38  ;;  %v744_v47 = vadd.f32 0.112945676, %v743_v12  ;;  %v694_v34 = vmul.f32 %v693_v62, %v2044_v58 }
 0x30b   :  { %v705_v37 = vmul.f32 %v704_v50, %v2044_v58  ;;  %v665_v50 = vmul.f32 %v664_v18, %v2042_v17  ;;  %v613_v12 = vadd.f32 0.05243302, %v612_v21 }
 0x30c   :  { %v626_v46 = vadd.f32 0.4994258, %v625_v45  ;;  %v745_v45 = vmul.f32 %v744_v47, %v2047_v8  ;;  %v695_v39 = vadd.f32 0.18741608, %v694_v34 }
 0x30d   :  { %v706_v42 = vadd.f32 0.4994258, %v705_v37  ;;  %v666_v37 = vadd.f32 0.4994258, %v665_v50 }
 0x30e   :  { %v627_v60 = vmul.f32 %v626_v46, %v2040_v38  ;;  %v733_v46 = vadd.f32 0.05243302, %v732_v63  ;;  %v696_v47 = vmul.f32 %v695_v39, %v2044_v58 }
 0x30f   :  { %v707_v40 = vmul.f32 %v706_v42, %v2044_v58  ;;  %v746_v42 = vadd.f32 0.4994258, %v745_v45  ;;  %v667_v11 = vmul.f32 %v666_v37, %v2042_v17  ;;  %v614_v45 = vmul.f32 %v613_v12, %v2040_v38 }
 0x310   :  { %v2071_v0 = vadd.f32 1.0, %v627_v60  ;;  %v649_v60 = vadd.f32 0.00028619796, %v648_v23  ;;  %v734_v50 = vmul.f32 %v733_v46, %v2047_v8 }
 0x311   :  { %v708_v36 = vadd.f32 1.0, %v707_v40  ;;  %v747_v62 = vmul.f32 %v746_v42, %v2047_v8  ;;  %v2088_v34 = vadd.f32 1.0, %v667_v11  ;;  %v697_v42 = vadd.f32 1.1283791, %v696_v47 }
 0x312   :  { %1379 = vrcp.f32 %v2071_v0  ;;  %v650_v37 = vmul.f32 %v649_v60, %v2042_v17  ;;  %v735_v25 = vadd.f32 0.18741608, %v734_v50  ;;  %v615_v39 = vadd.f32 0.18741608, %v614_v45 }
 0x313   :  { %1381 = vrcp.f32 %v708_v36  ;;  %v748_v4 = vadd.f32 1.0, %v747_v62  ;;  %v720_v27 = vand.u32 2147483648, %v708_v36  ;;  %v718_v58 = vand.u32 2147483647, %v708_v36 }
 0x314   :  { %v651_v46 = vadd.f32 0.0036580483, %v650_v37  ;;  %vm714_vm11 = vweird.f32 %v708_v36  ;;  %v698_v47 = vmul.f32 %v697_v42, %v2027_v59  ;;  %vm634_vm1 = vweird.f32 %v2071_v0 }
 0x315   :  { %1383 = vrcp.f32 %v748_v4  ;;  %v721_v60 = vor.u32 1.1754944e-38, %v720_v27  ;;  %vm719_vm0 = vcmp.eq.f32.partialorder %v718_v58, 8.507059e+37  ;;  %v638_v59 = vand.u32 2147483647, %v2071_v0 }
 0x316   :  { %1385 = vrcp.f32 %v2088_v34  ;;  %v652_v45 = vmul.f32 %v651_v46, %v2042_v17  ;;  %v758_v58 = vand.u32 2147483647, %v748_v4 }
 0x318   :  { %v2080_v18 = vpop.eup %1379 }
 0x319   :  { %v630_v40 = vmul.f32 %v2080_v18, %v2071_v0  ;;  %v1382_v31 = vpop.eup %1381  ;;  %vm635_vm4 = vweird.f32 %v2080_v18 }
 0x31a   :  { %v710_v63 = vmul.f32 %v1382_v31, %v708_v36  ;;  %vm715_vm8 = vweird.f32 %v1382_v31 }
 0x31b   :  { %v631_v21 = vsub.f32 1.0, %v630_v40  ;;  %v1384_v12 = vpop.eup %1383  ;;  %vm716_vm13 = vmor %vm714_vm11, %vm715_vm8  ;;  %v736_v40 = vmul.f32 %v735_v25, %v2047_v8  ;;  %v640_v8 = vand.u32 2147483648, %v2071_v0 }
 0x31c   :  { %v711_v23 = vsub.f32 1.0, %v710_v63  ;;  %v750_v50 = vmul.f32 %v1384_v12, %v748_v4  ;;  %vm755_vm8 = vweird.f32 %v1384_v12  ;;  %vm2108_vm11 = vmor %vm634_vm1, %vm635_vm4  ;;  %vm759_vm1 = vcmp.eq.f32.partialorder %v758_v58, 8.507059e+37 }
 0x31d   :  { %v632_v11 = vmul.f32 %v2080_v18, %v631_v21  ;;  %v2099_v21 = vpop.eup %1385  ;;  %v737_v36 = vadd.f32 1.1283791, %v736_v40  ;;  %vm674_vm4 = vweird.f32 %v2088_v34  ;;  %v678_v58 = vand.u32 2147483647, %v2088_v34 }
 0x31e   :  { %v712_v20 = vmul.f32 %v1382_v31, %v711_v23  ;;  %v616_v23 = vmul.f32 %v615_v39, %v2040_v38  ;;  %v751_v25 = vsub.f32 1.0, %v750_v50  ;;  %v600_v39 = vmul.f32 0.5, %v2016_v1 }
 0x31f   :  { %v641_v1 = vor.u32 1.1754944e-38, %v640_v8  ;;  %v738_v0 = vmul.f32 %v737_v36, %v2030_v28  ;;  %v601_v8 = vmul.f32 0.5, %v2018_v52  ;;  %v680_v52 = vand.u32 2147483648, %v2088_v34 }
 0x320   :  { %v713_v62 = vadd.f32 %v1382_v31, %v712_v20  ;;  %v633_v20 = vadd.f32 %v2080_v18, %v632_v11  ;;  %v752_v42 = vmul.f32 %v1384_v12, %v751_v25  ;;  %v617_v46 = vadd.f32 1.1283791, %v616_v23 }
 0x322   :  { %v717_v63 = vsel %vm716_vm13, %v1382_v31, %v713_v62  ;;  %v760_v31 = vand.u32 2147483648, %v748_v4  ;;  %v653_v62 = vadd.f32 0.05243302, %v652_v45  ;;  %v637_v40 = vsel %vm2108_vm11, %v2080_v18, %v633_v20 }
 0x323   :  { %v722_v37 = vsel %vm719_vm0, %v721_v60, %v717_v63  ;;  %v670_v60 = vmul.f32 %v2099_v21, %v2088_v34  ;;  %vm754_vm13 = vweird.f32 %v748_v4  ;;  %vm639_vm0 = vcmp.eq.f32.partialorder %v638_v59, 8.507059e+37 }
 0x324   :  { %v723_v27 = vmul.f32 %v722_v37, %v698_v47  ;;  %v753_v47 = vadd.f32 %v1384_v12, %v752_v42  ;;  %vm756_vm15 = vmor %vm754_vm13, %vm755_vm8  ;;  %v761_v50 = vor.u32 1.1754944e-38, %v760_v31  ;;  %v642_v45 = vsel %vm639_vm0, %v641_v1, %v637_v40 }
 0x325   :  { %v618_v25 = vmul.f32 %v617_v46, %v2021_v53  ;;  %v654_v11 = vmul.f32 %v653_v62, %v2042_v17  ;;  %v671_v18 = vsub.f32 1.0, %v670_v60  ;;  %v681_v60 = vor.u32 1.1754944e-38, %v680_v52 }
 0x326   :  { %v1340_v38 = vclamps-f32 %v723_v27, 1.0  ;;  %v757_v23 = vsel %vm756_vm15, %v1384_v12, %v753_v47  ;;  %vm675_vm15 = vweird.f32 %v2099_v21  ;;  %vm679_vm11 = vcmp.eq.f32.partialorder %v678_v58, 8.507059e+37 }
 0x327   :  { %v762_v27 = vsel %vm759_vm1, %v761_v50, %v757_v23  ;;  %v643_v4 = vmul.f32 %v642_v45, %v618_v25  ;;  %v655_v28 = vadd.f32 0.18741608, %v654_v11  ;;  %v672_v12 = vmul.f32 %v2099_v21, %v671_v18  ;;  %vm676_vm8 = vmor %vm674_vm4, %vm675_vm15 }
 0x328   :  { %v768_v63 = vadd.f32 1.0, %v1340_v38  ;;  %v763_v20 = vmul.f32 %v762_v27, %v738_v0 }
 0x329   :  { %v1338_v31 = vclamps-f32 %v643_v4, 1.0  ;;  %v656_v53 = vmul.f32 %v655_v28, %v2042_v17  ;;  %v673_v42 = vadd.f32 %v2099_v21, %v672_v12 }
 0x32a   :  { %v2118_v37 = vmul.f32 %v768_v63, %v600_v39  ;;  %v1341_v59 = vclamps-f32 %v763_v20, 1.0  ;;  %v598_v39 = vmul.f32 0.5, %v2012_v2 }
 0x32b   :  { %v766_v17 = vadd.f32 1.0, %v1338_v31  ;;  %v657_v46 = vadd.f32 1.1283791, %v656_v53  ;;  %v677_v62 = vsel %vm676_vm8, %v2099_v21, %v673_v42  ;;  %v599_v21 = vmul.f32 0.5, %v2014_v49 }
 0x32c   :  { %874 = vrot.lane.b32.xlu1 %v2118_v37, %s1535_s11  ;;  %v769_v36 = vadd.f32 1.0, %v1341_v59  ;;  %v682_v47 = vsel %vm679_vm11, %v681_v60, %v677_v62 }
 0x32d   :  { %v2142_v40 = vmul.f32 %v766_v17, %v598_v39  ;;  %v658_v63 = vmul.f32 %v657_v46, %v2024_v54 }
 0x32e   :  { %v2126_v38 = vmul.f32 %v769_v36, %v601_v8 }
 0x32f   :  { %v683_v2 = vmul.f32 %v682_v47, %v658_v63 }
 0x330   :  { %844 = vrot.lane.b32.xlu0 %v2126_v38, %s1533_s9  ;;  %892 = vrot.lane.b32.xlu2 %v2126_v38, %s1536_s12 }
 0x331   :  { %v1339_v34 = vclamps-f32 %v683_v2, 1.0 }
 0x333   :  { %v767_v54 = vadd.f32 1.0, %v1339_v34 }
 0x334   :  { %876 = vrot.lane.b32.xlu1 %v2126_v38, %s1535_s11 }
 0x335   :  { %v2158_v1 = vmul.f32 %v767_v54, %v599_v21 }
 0x338   :  { %886 = vrot.lane.b32.xlu0 %v2142_v40, %s1536_s12  ;;  %870 = vrot.lane.b32.xlu2 %v2142_v40, %s1535_s11 }
 0x33c   :  { %890 = vrot.lane.b32.xlu1 %v2118_v37, %s1536_s12 }
 0x340   :  { %838 = vrot.lane.b32.xlu0 %v2142_v40, %s1533_s9  ;;  %826 = vrot.lane.b32.xlu2 %v2118_v37, %s1532_s8 }
 0x344   :  { %842 = vrot.lane.b32.xlu1 %v2118_v37, %s1533_s9 }
 0x348   :  { %888 = vrot.lane.b32.xlu0 %v2158_v1, %s1536_s12  ;;  %872 = vrot.lane.b32.xlu2 %v2158_v1, %s1535_s11 }
 0x34c   :  { %858 = vrot.lane.b32.xlu1 %v2118_v37, %s1534_s10 }
 0x350   :  { %808 = vrot.lane.b32.xlu0 %v2158_v1, %s1531_s7  ;;  %794 = vrot.lane.b32.xlu2 %v2118_v37, %s1530_s3 }
 0x354   :  { %860 = vrot.lane.b32.xlu1 %v2126_v38, %s1534_s10 }
 0x358   :  { %840 = vrot.lane.b32.xlu0 %v2158_v1, %s1533_s9  ;;  %828 = vrot.lane.b32.xlu2 %v2126_v38, %s1532_s8 }
 0x35c   :  { %824 = vrot.lane.b32.xlu1 %v2158_v1, %s1532_s8 }
 0x360   :  { %778 = vrot.lane.b32.xlu0 %v2118_v37, %s1529_s2  ;;  %776 = vrot.lane.b32.xlu2 %v2158_v1, %s1529_s2 }
 0x364   :  { %854 = vrot.lane.b32.xlu1 %v2142_v40, %s1534_s10 }
 0x368   :  { %822 = vrot.lane.b32.xlu0 %v2142_v40, %s1532_s8  ;;  %812 = vrot.lane.b32.xlu2 %v2126_v38, %s1531_s7 }
 0x36c   :  { %792 = vrot.lane.b32.xlu1 %v2158_v1, %s1530_s3 }
 0x370   :  { %806 = vrot.lane.b32.xlu0 %v2142_v40, %s1531_s7  ;;  %790 = vrot.lane.b32.xlu2 %v2142_v40, %s1530_s3 }
 0x374   :  { %810 = vrot.lane.b32.xlu1 %v2118_v37, %s1531_s7 }
 0x37c   :  { %856 = vrot.lane.b32.xlu1 %v2158_v1, %s1534_s10 }
 0x384   :  { %796 = vrot.lane.b32.xlu1 %v2126_v38, %s1530_s3 }
 0x38a   :  { %v893_v50 = vpop.permute.xlu2 %892 }
 0x38c   :  { %780 = vrot.lane.b32.xlu1 %v2126_v38, %s1529_s2 }
 0x392   :  { %v2206_v45 = vpop.permute.xlu2 %870 }
 0x394   :  { %774 = vrot.lane.b32.xlu1 %v2142_v40, %s1529_s2 }
 0x39a   :  { %v827_v59 = vpop.permute.xlu2 %826 }
 0x39e   :  { %v2204_v49 = vpop.permute.xlu1 %874 }
 0x3a2   :  { %v845_v0 = vpop.permute.xlu0 %844  ;;  %v873_v36 = vpop.permute.xlu2 %872 }
 0x3a6   :  { %v877_v23 = vpop.permute.xlu1 %876 }
 0x3a7   :  { %v878_v52 = vsel %vm330_vm5, %v2204_v49, %v877_v23  ;;  %v881_v54 = vsel %vm330_vm5, %v877_v23, %v2206_v45 }
 0x3a8   :  { %v884_v17 = vmul.f32 %v878_v52, %v1757_v30  ;;  %v879_v52 = vsel %vm330_vm5, %v873_v36, %v2204_v49 }
 0x3aa   :  { %v887_v27 = vpop.permute.xlu0 %886  ;;  %v944_v62 = vrot.slane %v884_v17, 4  ;;  %v2238_v60 = vpop.permute.xlu2 %794 }
 0x3ab   :  { %v897_v25 = vsel %vm358_vm14, %v893_v50, %v887_v27 }
 0x3ac   :  { %v901_v18 = vmul.f32 %v897_v25, %v1848_v61 }
 0x3ae   :  { %v891_v11 = vpop.permute.xlu1 %890  ;;  %1348 = vmatpush.msk.msrb.mxu3 %vm426_vm9, %v901_v18 }
 0x3af   :  { %v894_v20 = vsel %vm358_vm14, %v891_v11, %v893_v50 }
 0x3b0   :  { %v900_v4 = vmul.f32 %v894_v20, %v1844_v35 }
 0x3b2   :  { %1346 = vmatpush.msk.msrb.mxu2 %vm426_vm9, %v900_v4  ;;  %v839_v8 = vpop.permute.xlu0 %838  ;;  %v829_v50 = vpop.permute.xlu2 %828 }
 0x3b3   :  { %v849_v21 = vsel %vm274_vm10, %v845_v0, %v839_v8 }
 0x3b6   :  { %v843_v28 = vpop.permute.xlu1 %842 }
 0x3b7   :  { %v846_v58 = vsel %vm274_vm10, %v843_v28, %v845_v0  ;;  %v830_v0 = vsel %vm246_vm3, %v827_v59, %v829_v50 }
 0x3b8   :  { %v852_v39 = vmul.f32 %v846_v58, %v1704_v9 }
 0x3ba   :  { %v889_v12 = vpop.permute.xlu0 %888  ;;  %v932_v47 = vrot.slane %v852_v39, 4 }
 0x3bb   :  { %v895_v31 = vsel %vm358_vm14, %v889_v12, %v891_v11  ;;  %v896_v61 = vsel %vm358_vm14, %v887_v27, %v889_v12  ;;  %v885_v27 = vmul.f32 %v881_v54, %v1781_v57  ;;  %v2257_v12 = vpop.permute.xlu2 %776 }
 0x3bc   :  { %v898_v42 = vmul.f32 %v896_v61, %v1899_v51  ;;  %v899_v35 = vmul.f32 %v895_v31, %v1903_v10  ;;  %v960_v30 = vsel %vm426_vm9, %v2118_v37, %v932_v47  ;;  %v837_v61 = vmul.f32 %v830_v0, %v1713_v13 }
 0x3bd   :  { %v945_v37 = vrot.slane %v885_v27, 4 }
 0x3be   :  { %v2220_v53 = vpop.permute.xlu1 %858  ;;  %1342 = vmatpush.msk.msrb.mxu0 %vm426_vm9, %v898_v42  ;;  %1344 = vmatpush.msk.msrb.mxu1 %vm426_vm9, %v899_v35  ;;  %v921_v58 = vrot.slane %v837_v61, 4 }
 0x3c2   :  { %v2233_v46 = vpop.permute.xlu0 %808 }
 0x3c3   :  { %v813_v17 = vpop.permute.xlu2 %812 }
 0x3c6   :  { %v861_v51 = vpop.permute.xlu1 %860 }
 0x3c7   :  { %v862_v10 = vsel %vm302_vm6, %v2220_v53, %v861_v51 }
 0x3c8   :  { %v868_v63 = vmul.f32 %v862_v10, %v1778_v56  ;;  %v853_v56 = vmul.f32 %v849_v21, %v1722_v16  ;;  %v2509_v10 = vld [vmem:[#allocation18_spill] sm:$0xff] }
 0x3ca   :  { %v964_v2 = vsel %vm426_vm9, %v868_v63, %v944_v62  ;;  %v841_v9 = vpop.permute.xlu0 %840  ;;  %v933_v18 = vrot.slane %v853_v56, 4  ;;  %v2510_v62 = vld [vmem:[#allocation19_spill] sm:$0xff]  ;;  %v883_v63 = vmul.f32 %v879_v52, %v1829_v26  ;;  %v2302_v56 = vld [vmem:[#allocation7] sm:$0xf] }
 0x3cb   :  { %1034 = vmatpush.msrb.mxu2 %v964_v2  ;;  %v848_v39 = vsel %vm274_vm10, %v839_v8, %v841_v9  ;;  %v847_v13 = vsel %vm274_vm10, %v841_v9, %v843_v28  ;;  %v2511_v9 = vld [vmem:[#allocation17_spill] sm:$0xff]  ;;  %vm2512_vm10 = vcmask 293888  }
 0x3cc   :  { %v961_v57 = vsel %vm426_vm9, %v2126_v38, %v933_v18  ;;  %v850_v2 = vmul.f32 %v848_v39, %v1761_v33  ;;  %v943_v26 = vrot.slane %v883_v63, 4 }
 0x3cd   :  { %1035 = vmatpush.msrb.mxu2 %v960_v30  ;;  %v851_v30 = vmul.f32 %v847_v13, %v1764_v44 }
 0x3ce   :  { %v825_v34 = vpop.permute.xlu1 %824  ;;  %v930_v18 = vrot.slane %v850_v2, 4 }
 0x3cf   :  { %v831_v31 = vsel %vm246_vm3, %v825_v34, %v827_v59  ;;  %v880_v59 = vsel %vm330_vm5, %v2206_v45, %v873_v36 }
 0x3d0   :  { %v836_v35 = vmul.f32 %v831_v31, %v1696_v6  ;;  %v882_v28 = vmul.f32 %v880_v59, %v1773_v55 }
 0x3d2   :  { %v2253_v20 = vpop.permute.xlu0 %778  ;;  %v920_v45 = vrot.slane %v836_v35, 4  ;;  %v942_v44 = vrot.slane %v882_v28, 4 }
 0x3d6   :  { %v855_v25 = vpop.permute.xlu1 %854 }
 0x3d7   :  { %v865_v11 = vsel %vm302_vm6, %v861_v51, %v855_v25 }
 0x3d8   :  { %v869_v4 = vmul.f32 %v865_v11, %v1814_v14 }
 0x3da   :  { %v965_v23 = vsel %vm426_vm9, %v869_v4, %v945_v37  ;;  %v823_v42 = vpop.permute.xlu0 %822  ;;  %v931_v4 = vrot.slane %v851_v30, 4 }
 0x3db   :  { %1054 = vmatpush.msrb.mxu3 %v965_v23  ;;  %v832_v55 = vsel %vm246_vm3, %v823_v42, %v825_v34  ;;  %v833_v33 = vsel %vm246_vm3, %v829_v50, %v823_v42  ;;  %vm2513_vm3 = vmmov %vm2512_vm10 }
 0x3dc   :  { %v834_v31 = vmul.f32 %v833_v33, %v1746_v24  ;;  %v958_v24 = vsel %vm426_vm9, %v2142_v40, %v930_v18 }
 0x3dd   :  { %1055 = vmatpush.msrb.mxu3 %v961_v57 }
 0x3de   :  { %v2261_v16 = vpop.permute.xlu1 %792 }
 0x3df   :  { %v799_v14 = vsel %vm190_vm2, %v2261_v16, %v2238_v60 }
 0x3e0   :  { %v804_v38 = vmul.f32 %v799_v14, %v1693_v5  ;;  %v783_v5 = vsel %vm162_vm7, %v2257_v12, %v2253_v20  ;;  %v835_v14 = vmul.f32 %v832_v55, %v1754_v29  ;;  %v959_v29 = vsel %vm426_vm9, %v2158_v1, %v931_v4  ;;  %v791_v1 = vpop.permute.xlu2 %790 }
 0x3e1   :  { %v788_v54 = vmul.f32 %v783_v5, %v2511_v9 }
 0x3e2   :  { %v908_v36 = vrot.slane %v804_v38, 4  ;;  %v807_v11 = vpop.permute.xlu0 %806 }
 0x3e3   :  { %v816_v57 = vsel %vm218_vm12, %v807_v11, %v2233_v46  ;;  %v817_v0 = vsel %vm218_vm12, %v813_v17, %v807_v11 }
 0x3e4   :  { %v952_v37 = vsel %vm426_vm9, %v788_v54, %v908_v36  ;;  %v819_v35 = vmul.f32 %v816_v57, %v1961_v41 }
 0x3e6   :  { %v811_v51 = vpop.permute.xlu1 %810 }
 0x3e7   :  { %v814_v6 = vsel %vm218_vm12, %v811_v51, %v813_v17  ;;  %v815_v49 = vsel %vm218_vm12, %v2233_v46, %v811_v51  ;;  %v818_v46 = vmul.f32 %v817_v0, %v1957_v32  ;;  %v800_v51 = vsel %vm190_vm2, %v791_v1, %v2261_v16 }
 0x3e8   :  { %v820_v8 = vmul.f32 %v815_v49, %v2509_v10  ;;  %v821_v47 = vmul.f32 %v814_v6, %v2510_v62  ;;  %v2515_v10 = vld [vmem:[#allocation21_spill] sm:$0xff] }
 0x3ea   :  { %v956_v21 = vsel %vm426_vm9, %v820_v8, %v920_v45  ;;  %v957_v27 = vsel %vm426_vm9, %v821_v47, %v921_v58  ;;  %v2514_v45 = vld [vmem:[#allocation20_spill] sm:$0xff] }
 0x3eb   :  { %1036 = vmatpush.msrb.mxu2 %v956_v21  ;;  %1056 = vmatpush.msrb.mxu3 %v957_v27 }
 0x3ed   :  { %1037 = vmatpush.msrb.mxu2 %v952_v37 }
 0x3ee   :  { %v857_v23 = vpop.permute.xlu1 %856  ;;  %1347 = vmatmul.msk.f32.vlgmr.msrb.gmra.mxu2 %vm2512_vm10, %v2302_v56 }
 0x3ef   :  { %v863_v34 = vsel %vm302_vm6, %v857_v23, %v2220_v53  ;;  %v864_v50 = vsel %vm302_vm6, %v855_v25, %v857_v23  ;;  %v918_v53 = vrot.slane %v834_v31, 4  ;;  %v919_v25 = vrot.slane %v835_v14, 4 }
 0x3f0   :  { %v866_v61 = vmul.f32 %v864_v50, %v1856_v3  ;;  %v867_v42 = vmul.f32 %v863_v34, %v1860_v7 }
 0x3f1   :  { %v954_v7 = vsel %vm426_vm9, %v818_v46, %v918_v53  ;;  %v955_v32 = vsel %vm426_vm9, %v819_v35, %v919_v25 }
 0x3f2   :  { %v962_v38 = vsel %vm426_vm9, %v866_v61, %v942_v44  ;;  %v963_v52 = vsel %vm426_vm9, %v867_v42, %v943_v26  ;;  %v1540_v61 = vmov 2   ;;  %v1541_v42 = vmov 3  }
 0x3f3   :  { %994 = vmatpush.msrb.mxu0 %v962_v38  ;;  %1014 = vmatpush.msrb.mxu1 %v963_v52 }
 0x3f4   :  { %1374 = vset.pattern.permute.xlu1 %v1540_v61  ;;  %1376 = vset.pattern.permute.xlu0 %v1541_v42 }
 0x3f5   :  { %995 = vmatpush.msrb.mxu0 %v958_v24  ;;  %1015 = vmatpush.msrb.mxu1 %v959_v29 }
 0x3f6   :  { %v797_v3 = vpop.permute.xlu1 %796 }
 0x3f7   :  { %996 = vmatpush.msrb.mxu0 %v954_v7  ;;  %1016 = vmatpush.msrb.mxu1 %v955_v32  ;;  %v798_v41 = vsel %vm190_vm2, %v2238_v60, %v797_v3  ;;  %v801_v13 = vsel %vm190_vm2, %v797_v3, %v791_v1  ;;  %vm2516_vm2 = vmmov %vm2513_vm3  ;;  %v2518_v32 = vld [vmem:[#allocation22_spill] sm:$0xff] }
 0x3f8   :  { %v805_v59 = vmul.f32 %v798_v41, %v1731_v19  ;;  %v803_v19 = vmul.f32 %v800_v51, %v1826_v22  ;;  %v802_v5 = vmul.f32 %v801_v13, %v1817_v15  ;;  %vm2517_vm12 = vmmov %vm2516_vm2 }
 0x3fa   :  { %v909_v17 = vrot.slane %v805_v59, 4  ;;  %v907_v6 = vrot.slane %v803_v19, 4  ;;  %v906_v49 = vrot.slane %v802_v5, 4 }
 0x3fe   :  { %v781_v58 = vpop.permute.xlu1 %780 }
 0x3ff   :  { %v782_v40 = vsel %vm162_vm7, %v2253_v20, %v781_v58 }
 0x400   :  { %v789_v39 = vmul.f32 %v782_v40, %v1916_v43 }
 0x402   :  { %v953_v60 = vsel %vm426_vm9, %v789_v39, %v909_v17 }
 0x403   :  { %1057 = vmatpush.msrb.mxu3 %v953_v60 }
 0x404   :  { %1349 = vmatmul.msk.f32.vlgmr.msrb.gmra.mxu3 %vm2513_vm3, %v2302_v56 }
 0x406   :  { %v775_v20 = vpop.permute.xlu1 %774 }
 0x407   :  { %v784_v43 = vsel %vm162_vm7, %v775_v20, %v2257_v12  ;;  %v785_v16 = vsel %vm162_vm7, %v781_v58, %v775_v20 }
 0x408   :  { %v786_v36 = vmul.f32 %v785_v16, %v2514_v45  ;;  %v787_v8 = vmul.f32 %v784_v43, %v2515_v10 }
 0x40a   :  { %v950_v22 = vsel %vm426_vm9, %v786_v36, %v906_v49  ;;  %v951_v15 = vsel %vm426_vm9, %v787_v8, %v907_v6 }
 0x40b   :  { %997 = vmatpush.msrb.mxu0 %v950_v22  ;;  %1017 = vmatpush.msrb.mxu1 %v951_v15 }
 0x40c   :  { %1343 = vmatmul.msk.f32.vlgmr.msrb.gmra.mxu0 %vm2516_vm2, %v2302_v56  ;;  %1345 = vmatmul.msk.f32.vlgmr.msrb.gmra.mxu1 %vm2517_vm12, %v2302_v56 }
 0x471   :  { %v1039_v48 = vpop.f32.mrf.mxu2 }
 0x472   :  { %v1065_v2 = vsel %vm426_vm9, %v1039_v48, 0.0 }
 0x487   :  { %v1059_v12 = vpop.f32.mrf.mxu3 }
 0x488   :  { %v1067_v9 = vsel %vm426_vm9, %v1059_v12, 0.0 }
 0x489   :  { %v999_v62 = vpop.f32.mrf.mxu0  ;;  %v1019_v47 = vpop.f32.mrf.mxu1 }
 0x48a   :  { %v1062_v28 = vsel %vm426_vm9, %v999_v62, 0.0  ;;  %v1063_v63 = vsel %vm426_vm9, %v1019_v47, 0.0 }
 0x48b   :  { %v1064_v30 = vadd.f32 %v1063_v63, %v1062_v28 }
 0x48d   :  { %v1066_v54 = vadd.f32 %v1065_v2, %v1064_v30 }
 0x48f   :  { %v1068_v21 = vadd.f32 %v1067_v9, %v1066_v54 }
 0x491   :  { %1069 = vadd.xlane.f32.xlu2 %v1068_v21 }
 0x504   :  { %v1070_v27 = vpop.xlane.xlu2 %1069 }
 0x505   :  { %v1071_v11 = vmul.f32 0.001953125, %v1070_v27 }
 0x507   :  { %v1072_v37 = vsub.f32 %v999_v62, %v1071_v11  ;;  %v1073_v56 = vsub.f32 %v1019_v47, %v1071_v11  ;;  %v1074_v55 = vsub.f32 %v1039_v48, %v1071_v11  ;;  %v1075_v33 = vsub.f32 %v1059_v12, %v1071_v11 }
 0x509   :  { %v1076_v44 = vmul.f32 %v1072_v37, %v1072_v37  ;;  %v1077_v26 = vmul.f32 %v1073_v56, %v1073_v56  ;;  %v1078_v18 = vmul.f32 %v1074_v55, %v1074_v55  ;;  %v1079_v4 = vmul.f32 %v1075_v33, %v1075_v33 }
 0x50b   :  { %v1080_v23 = vsel %vm426_vm9, %v1076_v44, 0.0  ;;  %v1081_v57 = vsel %vm426_vm9, %v1077_v26, 0.0  ;;  %v1083_v34 = vsel %vm426_vm9, %v1078_v18, 0.0  ;;  %v1085_v31 = vsel %vm426_vm9, %v1079_v4, 0.0 }
 0x50c   :  { %v1082_v0 = vadd.f32 %v1081_v57, %v1080_v23 }
 0x50e   :  { %v1084_v50 = vadd.f32 %v1083_v34, %v1082_v0 }
 0x510   :  { %v1086_v14 = vadd.f32 %v1085_v31, %v1084_v50 }
 0x512   :  { %1087 = vadd.xlane.f32.xlu0 %v1086_v14 }
 0x585   :  { %v1088_v46 = vpop.xlane.xlu0 %1087 }
 0x586   :  { %v1089_v35 = vmul.f32 0.001953125, %v1088_v46 }
 0x588   :  { %v1090_v38 = vadd.f32 1e-05, %v1089_v35 }
 0x58a   :  { %1387 = vrsqrt.f32 %v1090_v38  ;;  %vm1097_vm5 = vweird.f32 %v1090_v38 }
 0x590   :  { %v1388_v52 = vpop.eup %1387 }
 0x591   :  { %v1092_v53 = vmul.f32 %v1388_v52, %v1090_v38  ;;  %vm1098_vm7 = vweird.f32 %v1388_v52 }
 0x592   :  { %vm1099_vm6 = vmor %vm1097_vm5, %vm1098_vm7 }
 0x593   :  { %v1093_v25 = vmul.f32 %v1388_v52, %v1092_v53 }
 0x595   :  { %v1094_v24 = vmul.f32 0.5, %v1093_v25 }
 0x597   :  { %v1095_v29 = vsub.f32 1.5, %v1094_v24 }
 0x599   :  { %v1096_v3 = vmul.f32 %v1388_v52, %v1095_v29 }
 0x59b   :  { %v1100_v7 = vsel %vm1099_vm6, %v1388_v52, %v1096_v3 }
 0x59c   :  { %v1101_v41 = vmul.f32 %v1100_v7, %v2518_v32 }
 0x59e   :  { %1104 = vperm.xlu1 %1374, %v1101_v41  }
 0x5a6   :  { %1375 = vset.pattern.permute.xlu1 %v1541_v42 }
 0x5a7   :  { %1112 = vperm.xlu1 %1375, %v2518_v32  }
 0x610   :  { %v1105_v59 = vpop.permute.xlu1 %1104 }
 0x611   :  { %v1107_v58 = vmul.f32 %v1105_v59, %v1072_v37  ;;  %v1108_v40 = vmul.f32 %v1105_v59, %v1073_v56  ;;  %v1109_v1 = vmul.f32 %v1105_v59, %v1074_v55  ;;  %v1110_v17 = vmul.f32 %v1105_v59, %v1075_v33 }
 0x619   :  { %v1113_v39 = vpop.permute.xlu1 %1112 }
 0x61a   :  { %v2376_v51 = vadd.f32 %v1113_v39, %v1107_v58  ;;  %v2378_v13 = vadd.f32 %v1113_v39, %v1108_v40  ;;  %v2380_v60 = vadd.f32 %v1113_v39, %v1109_v1  ;;  %v2382_v19 = vadd.f32 %v1113_v39, %v1110_v17 }
 0x61c   :  { %v2385_v5 = vmul.f32 0.70710677, %v2376_v51  ;;  %v2388_v20 = vmul.f32 0.70710677, %v2378_v13  ;;  %v2391_v43 = vmul.f32 0.70710677, %v2380_v60 }
 0x61d   :  { %v2394_v16 = vmul.f32 0.70710677, %v2382_v19 }
 0x61e   :  { %v1127_v6 = vmul.f32 %v2385_v5, %v2385_v5  ;;  %v1167_v49 = vmul.f32 %v2388_v20, %v2388_v20  ;;  %v1207_v45 = vmul.f32 %v2391_v43, %v2391_v43 }
 0x61f   :  { %v1247_v36 = vmul.f32 %v2394_v16, %v2394_v16 }
 0x620   :  { %v2404_v10 = vmin.f32 %v1127_v6, 16.0  ;;  %v2406_v8 = vmin.f32 %v1167_v49, 16.0  ;;  %v2408_v22 = vmin.f32 %v1207_v45, 16.0 }
 0x621   :  { %v2410_v15 = vmin.f32 %v1247_v36, 16.0 }
 0x622   :  { %v1129_v48 = vmul.f32 2.1237322e-06, %v2404_v10  ;;  %v1140_v12 = vmul.f32 3.8918573e-05, %v2404_v10  ;;  %v1169_v62 = vmul.f32 2.1237322e-06, %v2406_v8 }
 0x623   :  { %v1180_v47 = vmul.f32 3.8918573e-05, %v2406_v8  ;;  %v1209_v28 = vmul.f32 2.1237322e-06, %v2408_v22  ;;  %v1220_v63 = vmul.f32 3.8918573e-05, %v2408_v22 }
 0x624   :  { %v1130_v2 = vadd.f32 0.00028619796, %v1129_v48  ;;  %v1141_v30 = vadd.f32 0.001143296, %v1140_v12  ;;  %v1170_v9 = vadd.f32 0.00028619796, %v1169_v62 }
 0x625   :  { %v1181_v54 = vadd.f32 0.001143296, %v1180_v47  ;;  %v1210_v21 = vadd.f32 0.00028619796, %v1209_v28  ;;  %v1221_v27 = vadd.f32 0.001143296, %v1220_v63 }
 0x626   :  { %v1131_v11 = vmul.f32 %v1130_v2, %v2404_v10  ;;  %v1142_v37 = vmul.f32 %v1141_v30, %v2404_v10  ;;  %v1171_v56 = vmul.f32 %v1170_v9, %v2406_v8  ;;  %v1249_v55 = vmul.f32 2.1237322e-06, %v2410_v15 }
 0x627   :  { %v1182_v33 = vmul.f32 %v1181_v54, %v2406_v8  ;;  %v1211_v44 = vmul.f32 %v1210_v21, %v2408_v22  ;;  %v1222_v26 = vmul.f32 %v1221_v27, %v2408_v22  ;;  %v1260_v18 = vmul.f32 3.8918573e-05, %v2410_v15 }
 0x628   :  { %v1132_v4 = vadd.f32 0.0036580483, %v1131_v11  ;;  %v1143_v23 = vadd.f32 0.014752088, %v1142_v37  ;;  %v1172_v57 = vadd.f32 0.0036580483, %v1171_v56 }
 0x629   :  { %v1183_v0 = vadd.f32 0.014752088, %v1182_v33  ;;  %v1212_v34 = vadd.f32 0.0036580483, %v1211_v44  ;;  %v1223_v50 = vadd.f32 0.014752088, %v1222_v26 }
 0x62a   :  { %v1133_v31 = vmul.f32 %v1132_v4, %v2404_v10  ;;  %v1144_v14 = vmul.f32 %v1143_v23, %v2404_v10  ;;  %v1173_v61 = vmul.f32 %v1172_v57, %v2406_v8  ;;  %v1250_v42 = vadd.f32 0.00028619796, %v1249_v55 }
 0x62b   :  { %v1184_v46 = vmul.f32 %v1183_v0, %v2406_v8  ;;  %v1213_v35 = vmul.f32 %v1212_v34, %v2408_v22  ;;  %v1224_v38 = vmul.f32 %v1223_v50, %v2408_v22  ;;  %v1261_v52 = vadd.f32 0.001143296, %v1260_v18 }
 0x62c   :  { %v1134_v53 = vadd.f32 0.05243302, %v1133_v31  ;;  %v1145_v25 = vadd.f32 0.112945676, %v1144_v14  ;;  %v1174_v24 = vadd.f32 0.05243302, %v1173_v61  ;;  %v1251_v7 = vmul.f32 %v1250_v42, %v2410_v15 }
 0x62d   :  { %v1185_v29 = vadd.f32 0.112945676, %v1184_v46  ;;  %v1225_v3 = vadd.f32 0.112945676, %v1224_v38  ;;  %v1262_v32 = vmul.f32 %v1261_v52, %v2410_v15  ;;  %v1214_v58 = vadd.f32 0.05243302, %v1213_v35 }
 0x62e   :  { %v1135_v41 = vmul.f32 %v1134_v53, %v2404_v10  ;;  %v1146_v59 = vmul.f32 %v1145_v25, %v2404_v10  ;;  %v1175_v6 = vmul.f32 %v1174_v24, %v2406_v8  ;;  %v1252_v36 = vadd.f32 0.0036580483, %v1251_v7 }
 0x62f   :  { %v1186_v40 = vmul.f32 %v1185_v29, %v2406_v8  ;;  %v1226_v1 = vmul.f32 %v1225_v3, %v2408_v22  ;;  %v1263_v17 = vadd.f32 0.014752088, %v1262_v32  ;;  %v1215_v47 = vmul.f32 %v1214_v58, %v2408_v22 }
 0x630   :  { %v1147_v39 = vadd.f32 0.4994258, %v1146_v59  ;;  %v1136_v12 = vadd.f32 0.18741608, %v1135_v41  ;;  %v1176_v9 = vadd.f32 0.18741608, %v1175_v6  ;;  %v1253_v27 = vmul.f32 %v1252_v36, %v2410_v15 }
 0x631   :  { %v1187_v49 = vadd.f32 0.4994258, %v1186_v40  ;;  %v1227_v45 = vadd.f32 0.4994258, %v1226_v1  ;;  %v1264_v48 = vmul.f32 %v1263_v17, %v2410_v15  ;;  %v1216_v37 = vadd.f32 0.18741608, %v1215_v47 }
 0x632   :  { %v1148_v62 = vmul.f32 %v1147_v39, %v2404_v10  ;;  %v1137_v11 = vmul.f32 %v1136_v12, %v2404_v10  ;;  %v1177_v55 = vmul.f32 %v1176_v9, %v2406_v8  ;;  %v1254_v33 = vadd.f32 0.05243302, %v1253_v27 }
 0x633   :  { %v1188_v28 = vmul.f32 %v1187_v49, %v2406_v8  ;;  %v1228_v63 = vmul.f32 %v1227_v45, %v2408_v22  ;;  %v1265_v2 = vadd.f32 0.112945676, %v1264_v48  ;;  %v1217_v26 = vmul.f32 %v1216_v37, %v2408_v22 }
 0x634   :  { %v1149_v30 = vadd.f32 1.0, %v1148_v62  ;;  %v1138_v44 = vadd.f32 1.1283791, %v1137_v11  ;;  %v1178_v23 = vadd.f32 1.1283791, %v1177_v55  ;;  %v1255_v10 = vmul.f32 %v1254_v33, %v2410_v15 }
 0x635   :  { %v1189_v54 = vadd.f32 1.0, %v1188_v28  ;;  %v2444_v21 = vadd.f32 1.0, %v1228_v63  ;;  %v1266_v56 = vmul.f32 %v1265_v2, %v2410_v15  ;;  %v1218_v8 = vadd.f32 1.1283791, %v1217_v26 }
 0x636   :  { %1389 = vrcp.f32 %v1149_v30  ;;  %v1139_v50 = vmul.f32 %v1138_v44, %v2385_v5  ;;  %vm1155_vm14 = vweird.f32 %v1149_v30  ;;  %v1159_v42 = vand.u32 2147483647, %v1149_v30 }
 0x637   :  { %1391 = vrcp.f32 %v1189_v54  ;;  %v1267_v18 = vadd.f32 0.4994258, %v1266_v56  ;;  %v1161_v46 = vand.u32 2147483648, %v1149_v30  ;;  %v1179_v22 = vmul.f32 %v1178_v23, %v2388_v20 }
 0x638   :  { %1393 = vrcp.f32 %v2444_v21  ;;  %vm1195_vm13 = vweird.f32 %v1189_v54  ;;  %v1201_v25 = vand.u32 2147483648, %v1189_v54  ;;  %v1199_v24 = vand.u32 2147483647, %v1189_v54 }
 0x639   :  { %v1268_v34 = vmul.f32 %v1267_v18, %v2410_v15  ;;  %vm1160_vm15 = vcmp.eq.f32.partialorder %v1159_v42, 8.507059e+37  ;;  %v1162_v7 = vor.u32 1.1754944e-38, %v1161_v46  ;;  %v1256_v32 = vadd.f32 0.18741608, %v1255_v10 }
 0x63a   :  { %vm1235_vm8 = vweird.f32 %v2444_v21  ;;  %v1202_v58 = vor.u32 1.1754944e-38, %v1201_v25  ;;  %v1239_v40 = vand.u32 2147483647, %v2444_v21  ;;  %v1241_v1 = vand.u32 2147483648, %v2444_v21 }
 0x63b   :  { %v2455_v35 = vadd.f32 1.0, %v1268_v34  ;;  %vm1200_vm3 = vcmp.eq.f32.partialorder %v1199_v24, 8.507059e+37  ;;  %v1257_v48 = vmul.f32 %v1256_v32, %v2410_v15  ;;  %v1120_v28 = vmul.f32 0.5, %v2378_v13 }
 0x63c   :  { %v1390_v4 = vpop.eup %1389  ;;  %v1242_v2 = vor.u32 1.1754944e-38, %v1241_v1  ;;  %v1219_v9 = vmul.f32 %v1218_v8, %v2391_v43  ;;  %vm1240_vm12 = vcmp.eq.f32.partialorder %v1239_v40, 8.507059e+37  ;;  %v1119_v33 = vmul.f32 0.5, %v2376_v51 }
 0x63d   :  { %v1392_v57 = vpop.eup %1391  ;;  %v1151_v0 = vmul.f32 %v1390_v4, %v1149_v30  ;;  %vm1156_vm0 = vweird.f32 %v1390_v4  ;;  %1395 = vrcp.f32 %v2455_v35  ;;  %v1258_v27 = vadd.f32 1.1283791, %v1257_v48 }
 0x63e   :  { %v1191_v31 = vmul.f32 %v1392_v57, %v1189_v54  ;;  %v1394_v14 = vpop.eup %1393  ;;  %vm1196_vm1 = vweird.f32 %v1392_v57  ;;  %vm1157_vm4 = vmor %vm1155_vm14, %vm1156_vm0  ;;  %v1279_v11 = vand.u32 2147483647, %v2455_v35  ;;  %v1281_v37 = vand.u32 2147483648, %v2455_v35 }
 0x63f   :  { %v1152_v61 = vsub.f32 1.0, %v1151_v0  ;;  %v1231_v52 = vmul.f32 %v1394_v14, %v2444_v21  ;;  %vm1236_vm11 = vweird.f32 %v1394_v14  ;;  %vm1197_vm10 = vmor %vm1195_vm13, %vm1196_vm1  ;;  %vm1275_vm5 = vweird.f32 %v2455_v35 }
 0x640   :  { %v1192_v38 = vsub.f32 1.0, %v1191_v31  ;;  %vm1237_vm2 = vmor %vm1235_vm8, %vm1236_vm11  ;;  %v1259_v43 = vmul.f32 %v1258_v27, %v2394_v16  ;;  %v1282_v18 = vor.u32 1.1754944e-38, %v1281_v37  ;;  %vm1280_vm14 = vcmp.eq.f32.partialorder %v1279_v11, 8.507059e+37  ;;  %v2519_v31 = vld [vmem:[#allocation15_spill] sm:$0xff] }
 0x641   :  { %v1153_v53 = vmul.f32 %v1390_v4, %v1152_v61  ;;  %v1232_v29 = vsub.f32 1.0, %v1231_v52  ;;  %v1122_v61 = vmul.f32 0.5, %v2382_v19  ;;  %v1121_v16 = vmul.f32 0.5, %v2380_v60 }
 0x642   :  { %v1193_v5 = vmul.f32 %v1392_v57, %v1192_v38 }
 0x643   :  { %v1154_v3 = vadd.f32 %v1390_v4, %v1153_v53  ;;  %v1233_v41 = vmul.f32 %v1394_v14, %v1232_v29  ;;  %v1396_v49 = vpop.eup %1395  ;;  %v2520_v53 = vld [vmem:[#allocation16_spill] sm:$0xff] }
 0x644   :  { %v1194_v20 = vadd.f32 %v1392_v57, %v1193_v5  ;;  %v1271_v47 = vmul.f32 %v1396_v49, %v2455_v35  ;;  %vm1276_vm7 = vweird.f32 %v1396_v49 }
 0x645   :  { %v1158_v59 = vsel %vm1157_vm4, %v1390_v4, %v1154_v3  ;;  %v1234_v6 = vadd.f32 %v1394_v14, %v1233_v41  ;;  %vm1277_vm6 = vmor %vm1275_vm5, %vm1276_vm7 }
 0x646   :  { %v1163_v17 = vsel %vm1160_vm15, %v1162_v7, %v1158_v59  ;;  %v1198_v39 = vsel %vm1197_vm10, %v1392_v57, %v1194_v20  ;;  %v1272_v54 = vsub.f32 1.0, %v1271_v47 }
 0x647   :  { %v1164_v45 = vmul.f32 %v1163_v17, %v1139_v50  ;;  %v1203_v36 = vsel %vm1200_vm3, %v1202_v58, %v1198_v39  ;;  %v1238_v62 = vsel %vm1237_vm2, %v1394_v14, %v1234_v6 }
 0x648   :  { %v1204_v12 = vmul.f32 %v1203_v36, %v1179_v22  ;;  %v1243_v21 = vsel %vm1240_vm12, %v1242_v2, %v1238_v62  ;;  %v1273_v15 = vmul.f32 %v1396_v49, %v1272_v54 }
 0x649   :  { %v1350_v63 = vclamps-f32 %v1164_v45, 1.0  ;;  %v1244_v13 = vmul.f32 %v1243_v21, %v1219_v9 }
 0x64a   :  { %v1351_v30 = vclamps-f32 %v1204_v12, 1.0  ;;  %v1274_v44 = vadd.f32 %v1396_v49, %v1273_v15 }
 0x64b   :  { %v1287_v56 = vadd.f32 1.0, %v1350_v63  ;;  %v1352_v10 = vclamps-f32 %v1244_v13, 1.0 }
 0x64c   :  { %v1288_v55 = vadd.f32 1.0, %v1351_v30  ;;  %v1278_v4 = vsel %vm1277_vm6, %v1396_v49, %v1274_v44 }
 0x64d   :  { %v1291_v23 = vmul.f32 %v1287_v56, %v1119_v33  ;;  %v1283_v0 = vsel %vm1280_vm14, %v1282_v18, %v1278_v4  ;;  %v1289_v42 = vadd.f32 1.0, %v1352_v10 }
 0x64e   :  { %v1292_v26 = vmul.f32 %v1288_v55, %v1120_v28  ;;  %v1284_v34 = vmul.f32 %v1283_v0, %v1259_v43 }
 0x64f   :  { %v1293_v22 = vmul.f32 %v1289_v42, %v1121_v16 }
 0x650   :  { %v1299_v57 = vrot.slane %v1292_v26, 4  ;;  %v1353_v8 = vclamps-f32 %v1284_v34, 1.0 }
 0x652   :  { %v1301_v50 = vsel %vm426_vm9, %v1291_v23, %v1299_v57  ;;  %v1290_v46 = vadd.f32 1.0, %v1353_v8 }
 0x653   :  { %v1305_v51 = vadd.f32 %v1301_v50, %v2519_v31 }
 0x654   :  { %v1294_v35 = vmul.f32 %v1290_v46, %v1122_v61 }
 0x655   :  { %v1307_v14 = vmul.f32 0.7072136, %v1305_v51 }
 0x656   :  { %v1300_v38 = vrot.slane %v1294_v35, 4 }
 0x657   :  { %1309 = vst [vmem:[#allocation10] sm:$0xff] %v1307_v14 }
 0x658   :  { %v1302_v52 = vsel %vm426_vm9, %v1293_v22, %v1300_v38 }
 0x659   :  { %v1306_v25 = vadd.f32 %v1302_v52, %v2520_v53 }
 0x65b   :  { %v1308_v5 = vmul.f32 0.7072136, %v1306_v25 }
 0x65d   :  { %1310 = vst [vmem:[#allocation10 + $0x8] sm:$0xff] %v1308_v5 }
 0x65e   :  { %1321 = dma.vmem_to_hbm [thread:$0]  %s1317_s14, 256, %s1319_s17, [#allocation4]  }
 0x65f   :  { %1523 = dma.done.wait [#allocation4], 256  }
 0x660   :  { %1524 = vsyncadd [#allocation4], 4294967040 }
 0x661   :  { %1326 = vsyncpa [#allocation3], 1 }
 0x662   :  { %1327 = vsyncpa [#allocation6], 1 }
 0x663   :  { %1328 = vsyncpa [#allocation9], 1 }
 0x664   :  { %1329 = vsyncpa [#allocation4], 1 }

</bundles_post_ra>
